<compile_context>
chip_gen: v5e
topology: v5e:2x2
jax: 0.10.0
libtpu: 0.0.40
codegen_flags: <defaults>
</compile_context>

<pallas_src>
import functools

import jax
import jax.numpy as jnp
from jax.experimental import pallas as pl
from jax.experimental.pallas import tpu as pltpu

# ---- module hyper-parameters (inputmodule_params / net_params / outmodule_params) ----
N_NODES = 16      # inputmodule_params['n_nodes']
HIDDEN = 32       # net_params['hidden_size']
LSTACKS = 2       # net_params['Lstacks']
DROPOUT = 0.0     # net_params['dropout'] (train-time only; inference forward has no dropout)
HD = 16           # outmodule_params['hd']
N_CLASSES = 2     # outmodule_params['n_classes']

BATCH = 4
SEQ = 8

_GATES = 4 * HIDDEN       # 128 lanes -> slab width = one full lane group
_SUBLANE = 8


def _slab_layout():
    """Row layout of the single packed parameter slab (width = 4H = 128 lanes).

    Every section starts at a multiple-of-8 row offset so the static carve
    slices inside the kernel are (8,128)-tile aligned."""
    layout = {}
    off = 0

    def add(name, rows):
        nonlocal off
        assert off % _SUBLANE == 0 and rows % _SUBLANE == 0
        layout[name] = (off, rows)
        off += rows

    add("w_ih0", N_NODES)            # (n_nodes, 4H)
    add("w_hh0", HIDDEN)             # (H, 4H)
    add("b0", _SUBLANE)              # bias row(s), gate-reordered, b_ih + b_hh
    for l in range(1, LSTACKS):
        add(f"w_ih{l}", HIDDEN)      # (H, 4H)
        add(f"w_hh{l}", HIDDEN)      # (H, 4H)
        add(f"b{l}", _SUBLANE)       # bias, row-replicated 8x
    add("fc1_w", HIDDEN)             # (H, hd) in cols [:HD], rest zero
    add("fc1_b", _SUBLANE)
    add("fc2_w", HD)                 # (hd, n_classes) in cols [:N_CLASSES], rest zero
    add("fc2_b", _SUBLANE)
    return layout, off


def _lstm_fc_kernel(seq, batch, x_ref, p_ref, out_ref):
    """Whole forward pass (stacked LSTM + FC head) in one invocation, no grid.

    x_ref : (T*B, n_nodes) time-major input in VMEM, B already padded to 8.
    p_ref : (rows, 4H) packed parameter slab in VMEM (single DMA), see _slab_layout().
    """
    H, T, B = HIDDEN, seq, batch
    layout, _ = _slab_layout()

    def rows(name, n=None):
        off, nrows = layout[name]
        n = nrows if n is None else n
        return p_ref[off:off + n, :]          # static, sublane-aligned carve

    w_ih0 = rows("w_ih0")                     # (n_nodes, 4H)
    w_hh0 = rows("w_hh0")                     # (H, 4H)
    b0 = rows("b0", 1)                        # (1, 4H)
    stacked = []
    for l in range(1, LSTACKS):
        stacked.append((rows(f"w_ih{l}"), rows(f"w_hh{l}"), rows(f"b{l}", B)))
    fc1_w = rows("fc1_w")                     # (H, 128)   cols >= HD are zero
    fc1_b = rows("fc1_b", B)                  # (B, 128)
    fc2_w = rows("fc2_w")                     # (HD, 128)  cols >= n_classes are zero
    fc2_b = rows("fc2_b", B)                  # (B, 128)

    # ---- Hoisted layer-0 input projection for ALL timesteps (bias folded in) ----
    # (T*B, n_nodes) @ (n_nodes, 4H) + b0  ->  (T*B, 4H); each timestep slice is one vreg.
    xproj = jnp.dot(x_ref[...], w_ih0, preferred_element_type=jnp.float32) + b0

    zero = jnp.zeros((B, H), jnp.float32)
    hs = [zero] * LSTACKS
    cs = [zero] * LSTACKS

    def cell(gates, c_prev):
        # Gate columns pre-ordered (i, f, o, g): sigmoid covers one contiguous 3H lane
        # slice, tanh the remaining H (2 EUP launch points for the gate nonlinearities).
        sfo = jax.nn.sigmoid(gates[:, :3 * H])
        g_g = jnp.tanh(gates[:, 3 * H:])
        i_g = sfo[:, 0:H]
        f_g = sfo[:, H:2 * H]
        o_g = sfo[:, 2 * H:3 * H]
        c_new = f_g * c_prev + i_g * g_g
        h_new = o_g * jnp.tanh(c_new)
        return h_new, c_new

    # ---- Fully unrolled time loop (T static & small: full scheduler visibility) ----
    for t in range(T):
        # Layer 0: input projection precomputed; only the recurrent matmul remains.
        gates0 = xproj[t * B:(t + 1) * B, :] + jnp.dot(
            hs[0], w_hh0, preferred_element_type=jnp.float32)
        hs[0], cs[0] = cell(gates0, cs[0])
        inp = hs[0]
        # Stacked layers: two small dots summed (no per-step lane concat on the chain).
        for l in range(1, LSTACKS):
            w_ih, w_hh, b_rows = stacked[l - 1]
            gates = (jnp.dot(inp, w_ih, preferred_element_type=jnp.float32)
                     + jnp.dot(hs[l], w_hh, preferred_element_type=jnp.float32)
                     + b_rows)
            hs[l], cs[l] = cell(gates, cs[l])
            inp = hs[l]

    # ---- FC head on the last timestep of the top LSTM layer ----
    last = hs[-1]                                                  # out[:, -1, :]
    z = jnp.maximum(
        jnp.dot(last, fc1_w, preferred_element_type=jnp.float32) + fc1_b, 0.0)
    out = jnp.dot(z[:, :HD], fc2_w, preferred_element_type=jnp.float32) + fc2_b
    out_ref[...] = out[:, :N_CLASSES].astype(out_ref.dtype)


def _reorder_gate_cols(w4h):
    """PyTorch gate column order (i, f, g, o) -> kernel order (i, f, o, g)."""
    H = HIDDEN
    return jnp.concatenate(
        [w4h[..., :2 * H], w4h[..., 3 * H:4 * H], w4h[..., 2 * H:3 * H]], axis=-1)


def pack_params(params):
    """One-time packing of all weights/biases into a single (rows, 4H) f32 slab."""
    layout, total_rows = _slab_layout()
    slab = jnp.zeros((total_rows, _GATES), jnp.float32)

    def put(name, mat):
        nonlocal slab
        off, _ = layout[name]
        r, c = mat.shape
        slab = slab.at[off:off + r, :c].set(mat.astype(jnp.float32))

    for l in range(LSTACKS):
        w_ih, w_hh, b_ih, b_hh = params["lstm"][l]
        put(f"w_ih{l}", _reorder_gate_cols(jnp.transpose(w_ih)))
        put(f"w_hh{l}", _reorder_gate_cols(jnp.transpose(w_hh)))
        bias = _reorder_gate_cols((b_ih + b_hh).reshape(1, -1))
        put(f"b{l}", jnp.tile(bias, (_SUBLANE, 1)))                # row-replicated
    fc1_w, fc1_b, fc2_w, fc2_b = params["fc"]
    put("fc1_w", jnp.transpose(fc1_w))                             # (H, hd)
    put("fc1_b", jnp.tile(fc1_b.reshape(1, -1), (_SUBLANE, 1)))
    put("fc2_w", jnp.transpose(fc2_w))                             # (hd, n_classes)
    put("fc2_b", jnp.tile(fc2_b.reshape(1, -1), (_SUBLANE, 1)))
    return slab


@jax.jit
def epilepsy_lstm_forward(x, slab):
    """x: (B, T, n_nodes) float32, batch_first like the PyTorch module.

    `slab` must come from pack_params() (call once, reuse per forward)."""
    B, T, N = x.shape
    b_pad = ((B + _SUBLANE - 1) // _SUBLANE) * _SUBLANE
    # Pad batch to a full sublane group so every per-timestep tensor in the kernel
    # is exactly one (8,128) vreg; slice the padding back off outside the kernel.
    x_p = jnp.zeros((b_pad, T, N), jnp.float32).at[:B].set(x.astype(jnp.float32))
    # Time-major flatten: hoisted layer-0 projection becomes one well-shaped matmul
    # whose per-timestep slices are tile-aligned (8, 4H) blocks.
    x_tm = jnp.transpose(x_p, (1, 0, 2)).reshape(T * b_pad, N)

    kernel = functools.partial(_lstm_fc_kernel, T, b_pad)
    out_pad = pl.pallas_call(
        kernel,
        out_shape=jax.ShapeDtypeStruct((b_pad, N_CLASSES), jnp.float32),
        in_specs=[pl.BlockSpec(memory_space=pltpu.MemorySpace.VMEM)] * 2,
        out_specs=pl.BlockSpec(memory_space=pltpu.MemorySpace.VMEM),
    )(x_tm, slab)
    return out_pad[:B]


def init_params(key):
    """Deterministic synthetic weights matching nn.LSTM / nn.Linear shapes."""
    params = {"lstm": [], "fc": None}
    bound = 1.0 / jnp.sqrt(HIDDEN)
    for l in range(LSTACKS):
        in_sz = N_NODES if l == 0 else HIDDEN
        key, k1, k2, k3, k4 = jax.random.split(key, 5)
        w_ih = jax.random.uniform(k1, (4 * HIDDEN, in_sz), jnp.float32, -bound, bound)
        w_hh = jax.random.uniform(k2, (4 * HIDDEN, HIDDEN), jnp.float32, -bound, bound)
        b_ih = jax.random.uniform(k3, (4 * HIDDEN,), jnp.float32, -bound, bound)
        b_hh = jax.random.uniform(k4, (4 * HIDDEN,), jnp.float32, -bound, bound)
        params["lstm"].append((w_ih, w_hh, b_ih, b_hh))
    key, k1, k2, k3, k4 = jax.random.split(key, 5)
    b1 = 1.0 / jnp.sqrt(HIDDEN)
    b2 = 1.0 / jnp.sqrt(HD)
    fc1_w = jax.random.uniform(k1, (HD, HIDDEN), jnp.float32, -b1, b1)
    fc1_b = jax.random.uniform(k2, (HD,), jnp.float32, -b1, b1)
    fc2_w = jax.random.uniform(k3, (N_CLASSES, HD), jnp.float32, -b2, b2)
    fc2_b = jax.random.uniform(k4, (N_CLASSES,), jnp.float32, -b2, b2)
    params["fc"] = (fc1_w, fc1_b, fc2_w, fc2_b)
    return params


def reference_forward(x, params):
    """Pure-JAX reference matching PyTorch LSTM + FC semantics (for verification)."""
    B = x.shape[0]
    H = HIDDEN
    h = [jnp.zeros((B, H), jnp.float32) for _ in range(LSTACKS)]
    c = [jnp.zeros((B, H), jnp.float32) for _ in range(LSTACKS)]
    for t in range(x.shape[1]):
        inp = x[:, t, :]
        for l in range(LSTACKS):
            w_ih, w_hh, b_ih, b_hh = params["lstm"][l]
            gates = inp @ w_ih.T + h[l] @ w_hh.T + b_ih + b_hh
            i = jax.nn.sigmoid(gates[:, :H])
            f = jax.nn.sigmoid(gates[:, H:2 * H])
            g = jnp.tanh(gates[:, 2 * H:3 * H])
            o = jax.nn.sigmoid(gates[:, 3 * H:])
            c[l] = f * c[l] + i * g
            h[l] = o * jnp.tanh(c[l])
            inp = h[l]
    fc1_w, fc1_b, fc2_w, fc2_b = params["fc"]
    z = jnp.maximum(h[-1] @ fc1_w.T + fc1_b, 0.0)
    return z @ fc2_w.T + fc2_b


if __name__ == "__main__":
    key = jax.random.PRNGKey(0)
    key, xkey = jax.random.split(key)
    x = jax.random.normal(xkey, (BATCH, SEQ, N_NODES), jnp.float32)
    params = init_params(key)
    slab = pack_params(params)     # one-time packing (single VMEM slab), reused per call

    out = epilepsy_lstm_forward(x, slab)
    out = jax.block_until_ready(out)

    ref = reference_forward(x, params)
    assert out.shape == (BATCH, N_CLASSES)
    assert jnp.allclose(out, ref, atol=1e-4, rtol=1e-4)
    print("KERNEL_OK")
</pallas_src>

<mosaic_0001>
module attributes {stable_mosaic.version = 11 : i64} {
  func.func @_lstm_fc_kernel(%arg0: memref<64x16xf32, #tpu.memory_space<vmem>>, %arg1: memref<192x128xf32, #tpu.memory_space<vmem>>, %arg2: memref<8x2xf32, #tpu.memory_space<vmem>>) attributes {dimension_semantics = [], scalar_prefetch = 0 : i64, scratch_operands = 0 : i64, tpu.core_type = #tpu.core_type<tc>} {
    %c0 = arith.constant 0 : index
    %c0_0 = arith.constant 0 : index
    %0 = vector.load %arg1[%c0, %c0_0] : memref<192x128xf32, #tpu.memory_space<vmem>>, vector<16x128xf32>
    %c16 = arith.constant 16 : index
    %c0_1 = arith.constant 0 : index
    %1 = vector.load %arg1[%c16, %c0_1] : memref<192x128xf32, #tpu.memory_space<vmem>>, vector<32x128xf32>
    %c48 = arith.constant 48 : index
    %c0_2 = arith.constant 0 : index
    %2 = vector.load %arg1[%c48, %c0_2] : memref<192x128xf32, #tpu.memory_space<vmem>>, vector<1x128xf32>
    %c56 = arith.constant 56 : index
    %c0_3 = arith.constant 0 : index
    %3 = vector.load %arg1[%c56, %c0_3] : memref<192x128xf32, #tpu.memory_space<vmem>>, vector<32x128xf32>
    %c88 = arith.constant 88 : index
    %c0_4 = arith.constant 0 : index
    %4 = vector.load %arg1[%c88, %c0_4] : memref<192x128xf32, #tpu.memory_space<vmem>>, vector<32x128xf32>
    %c120 = arith.constant 120 : index
    %c0_5 = arith.constant 0 : index
    %5 = vector.load %arg1[%c120, %c0_5] : memref<192x128xf32, #tpu.memory_space<vmem>>, vector<8x128xf32>
    %c128 = arith.constant 128 : index
    %c0_6 = arith.constant 0 : index
    %6 = vector.load %arg1[%c128, %c0_6] : memref<192x128xf32, #tpu.memory_space<vmem>>, vector<32x128xf32>
    %c160 = arith.constant 160 : index
    %c0_7 = arith.constant 0 : index
    %7 = vector.load %arg1[%c160, %c0_7] : memref<192x128xf32, #tpu.memory_space<vmem>>, vector<8x128xf32>
    %c168 = arith.constant 168 : index
    %c0_8 = arith.constant 0 : index
    %8 = vector.load %arg1[%c168, %c0_8] : memref<192x128xf32, #tpu.memory_space<vmem>>, vector<16x128xf32>
    %c184 = arith.constant 184 : index
    %c0_9 = arith.constant 0 : index
    %9 = vector.load %arg1[%c184, %c0_9] : memref<192x128xf32, #tpu.memory_space<vmem>>, vector<8x128xf32>
    %c0_10 = arith.constant 0 : index
    %c0_11 = arith.constant 0 : index
    %10 = vector.load %arg0[%c0_10, %c0_11] : memref<64x16xf32, #tpu.memory_space<vmem>>, vector<64x16xf32>
    %cst = arith.constant dense<0.000000e+00> : vector<64x128xf32>
    %11 = tpu.matmul %10, %0, %cst {dimension_numbers = #tpu.dot_dimension_numbers<[1], [0], [0], [1], [0, 0, 1, 1], [], []>} : vector<64x16xf32>, vector<16x128xf32>, vector<64x128xf32> -> vector<64x128xf32>
    %12 = vector.broadcast %2 : vector<1x128xf32> to vector<64x128xf32>
    %13 = arith.addf %11, %12 : vector<64x128xf32>
    %cst_12 = arith.constant 0.000000e+00 : f32
    %14 = vector.broadcast %cst_12 : f32 to vector<8x32xf32>
    %15 = vector.extract_strided_slice %13 {offsets = [0, 0], sizes = [8, 128], strides = [1, 1]} : vector<64x128xf32> to vector<8x128xf32>
    %cst_13 = arith.constant dense<0.000000e+00> : vector<8x128xf32>
    %16 = tpu.matmul %14, %1, %cst_13 {dimension_numbers = #tpu.dot_dimension_numbers<[1], [0], [0], [1], [0, 0, 1, 1], [], []>} : vector<8x32xf32>, vector<32x128xf32>, vector<8x128xf32> -> vector<8x128xf32>
    %17 = arith.addf %15, %16 : vector<8x128xf32>
    %18 = vector.extract_strided_slice %17 {offsets = [0, 0], sizes = [8, 96], strides = [1, 1]} : vector<8x128xf32> to vector<8x96xf32>
    %19 = arith.negf %18 : vector<8x96xf32>
    %20 = math.exp %19 : vector<8x96xf32>
    %cst_14 = arith.constant 1.000000e+00 : f32
    %21 = vector.broadcast %cst_14 : f32 to vector<8x96xf32>
    %22 = arith.addf %21, %20 : vector<8x96xf32>
    %23 = arith.divf %21, %22 : vector<8x96xf32>
    %24 = vector.extract_strided_slice %17 {offsets = [0, 96], sizes = [8, 32], strides = [1, 1]} : vector<8x128xf32> to vector<8x32xf32>
    %25 = math.tanh %24 : vector<8x32xf32>
    %26 = vector.extract_strided_slice %23 {offsets = [0, 0], sizes = [8, 32], strides = [1, 1]} : vector<8x96xf32> to vector<8x32xf32>
    %27 = vector.extract_strided_slice %23 {offsets = [0, 32], sizes = [8, 32], strides = [1, 1]} : vector<8x96xf32> to vector<8x32xf32>
    %28 = vector.extract_strided_slice %23 {offsets = [0, 64], sizes = [8, 32], strides = [1, 1]} : vector<8x96xf32> to vector<8x32xf32>
    %29 = arith.mulf %27, %14 : vector<8x32xf32>
    %30 = arith.mulf %26, %25 : vector<8x32xf32>
    %31 = arith.addf %29, %30 : vector<8x32xf32>
    %32 = math.tanh %31 : vector<8x32xf32>
    %33 = arith.mulf %28, %32 : vector<8x32xf32>
    %cst_15 = arith.constant dense<0.000000e+00> : vector<8x128xf32>
    %34 = tpu.matmul %33, %3, %cst_15 {dimension_numbers = #tpu.dot_dimension_numbers<[1], [0], [0], [1], [0, 0, 1, 1], [], []>} : vector<8x32xf32>, vector<32x128xf32>, vector<8x128xf32> -> vector<8x128xf32>
    %cst_16 = arith.constant dense<0.000000e+00> : vector<8x128xf32>
    %35 = tpu.matmul %14, %4, %cst_16 {dimension_numbers = #tpu.dot_dimension_numbers<[1], [0], [0], [1], [0, 0, 1, 1], [], []>} : vector<8x32xf32>, vector<32x128xf32>, vector<8x128xf32> -> vector<8x128xf32>
    %36 = arith.addf %34, %35 : vector<8x128xf32>
    %37 = arith.addf %36, %5 : vector<8x128xf32>
    %38 = vector.extract_strided_slice %37 {offsets = [0, 0], sizes = [8, 96], strides = [1, 1]} : vector<8x128xf32> to vector<8x96xf32>
    %39 = arith.negf %38 : vector<8x96xf32>
    %40 = math.exp %39 : vector<8x96xf32>
    %cst_17 = arith.constant 1.000000e+00 : f32
    %41 = vector.broadcast %cst_17 : f32 to vector<8x96xf32>
    %42 = arith.addf %41, %40 : vector<8x96xf32>
    %43 = arith.divf %41, %42 : vector<8x96xf32>
    %44 = vector.extract_strided_slice %37 {offsets = [0, 96], sizes = [8, 32], strides = [1, 1]} : vector<8x128xf32> to vector<8x32xf32>
    %45 = math.tanh %44 : vector<8x32xf32>
    %46 = vector.extract_strided_slice %43 {offsets = [0, 0], sizes = [8, 32], strides = [1, 1]} : vector<8x96xf32> to vector<8x32xf32>
    %47 = vector.extract_strided_slice %43 {offsets = [0, 32], sizes = [8, 32], strides = [1, 1]} : vector<8x96xf32> to vector<8x32xf32>
    %48 = vector.extract_strided_slice %43 {offsets = [0, 64], sizes = [8, 32], strides = [1, 1]} : vector<8x96xf32> to vector<8x32xf32>
    %49 = arith.mulf %47, %14 : vector<8x32xf32>
    %50 = arith.mulf %46, %45 : vector<8x32xf32>
    %51 = arith.addf %49, %50 : vector<8x32xf32>
    %52 = math.tanh %51 : vector<8x32xf32>
    %53 = arith.mulf %48, %52 : vector<8x32xf32>
    %54 = vector.extract_strided_slice %13 {offsets = [8, 0], sizes = [8, 128], strides = [1, 1]} : vector<64x128xf32> to vector<8x128xf32>
    %cst_18 = arith.constant dense<0.000000e+00> : vector<8x128xf32>
    %55 = tpu.matmul %33, %1, %cst_18 {dimension_numbers = #tpu.dot_dimension_numbers<[1], [0], [0], [1], [0, 0, 1, 1], [], []>} : vector<8x32xf32>, vector<32x128xf32>, vector<8x128xf32> -> vector<8x128xf32>
    %56 = arith.addf %54, %55 : vector<8x128xf32>
    %57 = vector.extract_strided_slice %56 {offsets = [0, 0], sizes = [8, 96], strides = [1, 1]} : vector<8x128xf32> to vector<8x96xf32>
    %58 = arith.negf %57 : vector<8x96xf32>
    %59 = math.exp %58 : vector<8x96xf32>
    %cst_19 = arith.constant 1.000000e+00 : f32
    %60 = vector.broadcast %cst_19 : f32 to vector<8x96xf32>
    %61 = arith.addf %60, %59 : vector<8x96xf32>
    %62 = arith.divf %60, %61 : vector<8x96xf32>
    %63 = vector.extract_strided_slice %56 {offsets = [0, 96], sizes = [8, 32], strides = [1, 1]} : vector<8x128xf32> to vector<8x32xf32>
    %64 = math.tanh %63 : vector<8x32xf32>
    %65 = vector.extract_strided_slice %62 {offsets = [0, 0], sizes = [8, 32], strides = [1, 1]} : vector<8x96xf32> to vector<8x32xf32>
    %66 = vector.extract_strided_slice %62 {offsets = [0, 32], sizes = [8, 32], strides = [1, 1]} : vector<8x96xf32> to vector<8x32xf32>
    %67 = vector.extract_strided_slice %62 {offsets = [0, 64], sizes = [8, 32], strides = [1, 1]} : vector<8x96xf32> to vector<8x32xf32>
    %68 = arith.mulf %66, %31 : vector<8x32xf32>
    %69 = arith.mulf %65, %64 : vector<8x32xf32>
    %70 = arith.addf %68, %69 : vector<8x32xf32>
    %71 = math.tanh %70 : vector<8x32xf32>
    %72 = arith.mulf %67, %71 : vector<8x32xf32>
    %cst_20 = arith.constant dense<0.000000e+00> : vector<8x128xf32>
    %73 = tpu.matmul %72, %3, %cst_20 {dimension_numbers = #tpu.dot_dimension_numbers<[1], [0], [0], [1], [0, 0, 1, 1], [], []>} : vector<8x32xf32>, vector<32x128xf32>, vector<8x128xf32> -> vector<8x128xf32>
    %cst_21 = arith.constant dense<0.000000e+00> : vector<8x128xf32>
    %74 = tpu.matmul %53, %4, %cst_21 {dimension_numbers = #tpu.dot_dimension_numbers<[1], [0], [0], [1], [0, 0, 1, 1], [], []>} : vector<8x32xf32>, vector<32x128xf32>, vector<8x128xf32> -> vector<8x128xf32>
    %75 = arith.addf %73, %74 : vector<8x128xf32>
    %76 = arith.addf %75, %5 : vector<8x128xf32>
    %77 = vector.extract_strided_slice %76 {offsets = [0, 0], sizes = [8, 96], strides = [1, 1]} : vector<8x128xf32> to vector<8x96xf32>
    %78 = arith.negf %77 : vector<8x96xf32>
    %79 = math.exp %78 : vector<8x96xf32>
    %cst_22 = arith.constant 1.000000e+00 : f32
    %80 = vector.broadcast %cst_22 : f32 to vector<8x96xf32>
    %81 = arith.addf %80, %79 : vector<8x96xf32>
    %82 = arith.divf %80, %81 : vector<8x96xf32>
    %83 = vector.extract_strided_slice %76 {offsets = [0, 96], sizes = [8, 32], strides = [1, 1]} : vector<8x128xf32> to vector<8x32xf32>
    %84 = math.tanh %83 : vector<8x32xf32>
    %85 = vector.extract_strided_slice %82 {offsets = [0, 0], sizes = [8, 32], strides = [1, 1]} : vector<8x96xf32> to vector<8x32xf32>
    %86 = vector.extract_strided_slice %82 {offsets = [0, 32], sizes = [8, 32], strides = [1, 1]} : vector<8x96xf32> to vector<8x32xf32>
    %87 = vector.extract_strided_slice %82 {offsets = [0, 64], sizes = [8, 32], strides = [1, 1]} : vector<8x96xf32> to vector<8x32xf32>
    %88 = arith.mulf %86, %51 : vector<8x32xf32>
    %89 = arith.mulf %85, %84 : vector<8x32xf32>
    %90 = arith.addf %88, %89 : vector<8x32xf32>
    %91 = math.tanh %90 : vector<8x32xf32>
    %92 = arith.mulf %87, %91 : vector<8x32xf32>
    %93 = vector.extract_strided_slice %13 {offsets = [16, 0], sizes = [8, 128], strides = [1, 1]} : vector<64x128xf32> to vector<8x128xf32>
    %cst_23 = arith.constant dense<0.000000e+00> : vector<8x128xf32>
    %94 = tpu.matmul %72, %1, %cst_23 {dimension_numbers = #tpu.dot_dimension_numbers<[1], [0], [0], [1], [0, 0, 1, 1], [], []>} : vector<8x32xf32>, vector<32x128xf32>, vector<8x128xf32> -> vector<8x128xf32>
    %95 = arith.addf %93, %94 : vector<8x128xf32>
    %96 = vector.extract_strided_slice %95 {offsets = [0, 0], sizes = [8, 96], strides = [1, 1]} : vector<8x128xf32> to vector<8x96xf32>
    %97 = arith.negf %96 : vector<8x96xf32>
    %98 = math.exp %97 : vector<8x96xf32>
    %cst_24 = arith.constant 1.000000e+00 : f32
    %99 = vector.broadcast %cst_24 : f32 to vector<8x96xf32>
    %100 = arith.addf %99, %98 : vector<8x96xf32>
    %101 = arith.divf %99, %100 : vector<8x96xf32>
    %102 = vector.extract_strided_slice %95 {offsets = [0, 96], sizes = [8, 32], strides = [1, 1]} : vector<8x128xf32> to vector<8x32xf32>
    %103 = math.tanh %102 : vector<8x32xf32>
    %104 = vector.extract_strided_slice %101 {offsets = [0, 0], sizes = [8, 32], strides = [1, 1]} : vector<8x96xf32> to vector<8x32xf32>
    %105 = vector.extract_strided_slice %101 {offsets = [0, 32], sizes = [8, 32], strides = [1, 1]} : vector<8x96xf32> to vector<8x32xf32>
    %106 = vector.extract_strided_slice %101 {offsets = [0, 64], sizes = [8, 32], strides = [1, 1]} : vector<8x96xf32> to vector<8x32xf32>
    %107 = arith.mulf %105, %70 : vector<8x32xf32>
    %108 = arith.mulf %104, %103 : vector<8x32xf32>
    %109 = arith.addf %107, %108 : vector<8x32xf32>
    %110 = math.tanh %109 : vector<8x32xf32>
    %111 = arith.mulf %106, %110 : vector<8x32xf32>
    %cst_25 = arith.constant dense<0.000000e+00> : vector<8x128xf32>
    %112 = tpu.matmul %111, %3, %cst_25 {dimension_numbers = #tpu.dot_dimension_numbers<[1], [0], [0], [1], [0, 0, 1, 1], [], []>} : vector<8x32xf32>, vector<32x128xf32>, vector<8x128xf32> -> vector<8x128xf32>
    %cst_26 = arith.constant dense<0.000000e+00> : vector<8x128xf32>
    %113 = tpu.matmul %92, %4, %cst_26 {dimension_numbers = #tpu.dot_dimension_numbers<[1], [0], [0], [1], [0, 0, 1, 1], [], []>} : vector<8x32xf32>, vector<32x128xf32>, vector<8x128xf32> -> vector<8x128xf32>
    %114 = arith.addf %112, %113 : vector<8x128xf32>
    %115 = arith.addf %114, %5 : vector<8x128xf32>
    %116 = vector.extract_strided_slice %115 {offsets = [0, 0], sizes = [8, 96], strides = [1, 1]} : vector<8x128xf32> to vector<8x96xf32>
    %117 = arith.negf %116 : vector<8x96xf32>
    %118 = math.exp %117 : vector<8x96xf32>
    %cst_27 = arith.constant 1.000000e+00 : f32
    %119 = vector.broadcast %cst_27 : f32 to vector<8x96xf32>
    %120 = arith.addf %119, %118 : vector<8x96xf32>
    %121 = arith.divf %119, %120 : vector<8x96xf32>
    %122 = vector.extract_strided_slice %115 {offsets = [0, 96], sizes = [8, 32], strides = [1, 1]} : vector<8x128xf32> to vector<8x32xf32>
    %123 = math.tanh %122 : vector<8x32xf32>
    %124 = vector.extract_strided_slice %121 {offsets = [0, 0], sizes = [8, 32], strides = [1, 1]} : vector<8x96xf32> to vector<8x32xf32>
    %125 = vector.extract_strided_slice %121 {offsets = [0, 32], sizes = [8, 32], strides = [1, 1]} : vector<8x96xf32> to vector<8x32xf32>
    %126 = vector.extract_strided_slice %121 {offsets = [0, 64], sizes = [8, 32], strides = [1, 1]} : vector<8x96xf32> to vector<8x32xf32>
    %127 = arith.mulf %125, %90 : vector<8x32xf32>
    %128 = arith.mulf %124, %123 : vector<8x32xf32>
    %129 = arith.addf %127, %128 : vector<8x32xf32>
    %130 = math.tanh %129 : vector<8x32xf32>
    %131 = arith.mulf %126, %130 : vector<8x32xf32>
    %132 = vector.extract_strided_slice %13 {offsets = [24, 0], sizes = [8, 128], strides = [1, 1]} : vector<64x128xf32> to vector<8x128xf32>
    %cst_28 = arith.constant dense<0.000000e+00> : vector<8x128xf32>
    %133 = tpu.matmul %111, %1, %cst_28 {dimension_numbers = #tpu.dot_dimension_numbers<[1], [0], [0], [1], [0, 0, 1, 1], [], []>} : vector<8x32xf32>, vector<32x128xf32>, vector<8x128xf32> -> vector<8x128xf32>
    %134 = arith.addf %132, %133 : vector<8x128xf32>
    %135 = vector.extract_strided_slice %134 {offsets = [0, 0], sizes = [8, 96], strides = [1, 1]} : vector<8x128xf32> to vector<8x96xf32>
    %136 = arith.negf %135 : vector<8x96xf32>
    %137 = math.exp %136 : vector<8x96xf32>
    %cst_29 = arith.constant 1.000000e+00 : f32
    %138 = vector.broadcast %cst_29 : f32 to vector<8x96xf32>
    %139 = arith.addf %138, %137 : vector<8x96xf32>
    %140 = arith.divf %138, %139 : vector<8x96xf32>
    %141 = vector.extract_strided_slice %134 {offsets = [0, 96], sizes = [8, 32], strides = [1, 1]} : vector<8x128xf32> to vector<8x32xf32>
    %142 = math.tanh %141 : vector<8x32xf32>
    %143 = vector.extract_strided_slice %140 {offsets = [0, 0], sizes = [8, 32], strides = [1, 1]} : vector<8x96xf32> to vector<8x32xf32>
    %144 = vector.extract_strided_slice %140 {offsets = [0, 32], sizes = [8, 32], strides = [1, 1]} : vector<8x96xf32> to vector<8x32xf32>
    %145 = vector.extract_strided_slice %140 {offsets = [0, 64], sizes = [8, 32], strides = [1, 1]} : vector<8x96xf32> to vector<8x32xf32>
    %146 = arith.mulf %144, %109 : vector<8x32xf32>
    %147 = arith.mulf %143, %142 : vector<8x32xf32>
    %148 = arith.addf %146, %147 : vector<8x32xf32>
    %149 = math.tanh %148 : vector<8x32xf32>
    %150 = arith.mulf %145, %149 : vector<8x32xf32>
    %cst_30 = arith.constant dense<0.000000e+00> : vector<8x128xf32>
    %151 = tpu.matmul %150, %3, %cst_30 {dimension_numbers = #tpu.dot_dimension_numbers<[1], [0], [0], [1], [0, 0, 1, 1], [], []>} : vector<8x32xf32>, vector<32x128xf32>, vector<8x128xf32> -> vector<8x128xf32>
    %cst_31 = arith.constant dense<0.000000e+00> : vector<8x128xf32>
    %152 = tpu.matmul %131, %4, %cst_31 {dimension_numbers = #tpu.dot_dimension_numbers<[1], [0], [0], [1], [0, 0, 1, 1], [], []>} : vector<8x32xf32>, vector<32x128xf32>, vector<8x128xf32> -> vector<8x128xf32>
    %153 = arith.addf %151, %152 : vector<8x128xf32>
    %154 = arith.addf %153, %5 : vector<8x128xf32>
    %155 = vector.extract_strided_slice %154 {offsets = [0, 0], sizes = [8, 96], strides = [1, 1]} : vector<8x128xf32> to vector<8x96xf32>
    %156 = arith.negf %155 : vector<8x96xf32>
    %157 = math.exp %156 : vector<8x96xf32>
    %cst_32 = arith.constant 1.000000e+00 : f32
    %158 = vector.broadcast %cst_32 : f32 to vector<8x96xf32>
    %159 = arith.addf %158, %157 : vector<8x96xf32>
    %160 = arith.divf %158, %159 : vector<8x96xf32>
    %161 = vector.extract_strided_slice %154 {offsets = [0, 96], sizes = [8, 32], strides = [1, 1]} : vector<8x128xf32> to vector<8x32xf32>
    %162 = math.tanh %161 : vector<8x32xf32>
    %163 = vector.extract_strided_slice %160 {offsets = [0, 0], sizes = [8, 32], strides = [1, 1]} : vector<8x96xf32> to vector<8x32xf32>
    %164 = vector.extract_strided_slice %160 {offsets = [0, 32], sizes = [8, 32], strides = [1, 1]} : vector<8x96xf32> to vector<8x32xf32>
    %165 = vector.extract_strided_slice %160 {offsets = [0, 64], sizes = [8, 32], strides = [1, 1]} : vector<8x96xf32> to vector<8x32xf32>
    %166 = arith.mulf %164, %129 : vector<8x32xf32>
    %167 = arith.mulf %163, %162 : vector<8x32xf32>
    %168 = arith.addf %166, %167 : vector<8x32xf32>
    %169 = math.tanh %168 : vector<8x32xf32>
    %170 = arith.mulf %165, %169 : vector<8x32xf32>
    %171 = vector.extract_strided_slice %13 {offsets = [32, 0], sizes = [8, 128], strides = [1, 1]} : vector<64x128xf32> to vector<8x128xf32>
    %cst_33 = arith.constant dense<0.000000e+00> : vector<8x128xf32>
    %172 = tpu.matmul %150, %1, %cst_33 {dimension_numbers = #tpu.dot_dimension_numbers<[1], [0], [0], [1], [0, 0, 1, 1], [], []>} : vector<8x32xf32>, vector<32x128xf32>, vector<8x128xf32> -> vector<8x128xf32>
    %173 = arith.addf %171, %172 : vector<8x128xf32>
    %174 = vector.extract_strided_slice %173 {offsets = [0, 0], sizes = [8, 96], strides = [1, 1]} : vector<8x128xf32> to vector<8x96xf32>
    %175 = arith.negf %174 : vector<8x96xf32>
    %176 = math.exp %175 : vector<8x96xf32>
    %cst_34 = arith.constant 1.000000e+00 : f32
    %177 = vector.broadcast %cst_34 : f32 to vector<8x96xf32>
    %178 = arith.addf %177, %176 : vector<8x96xf32>
    %179 = arith.divf %177, %178 : vector<8x96xf32>
    %180 = vector.extract_strided_slice %173 {offsets = [0, 96], sizes = [8, 32], strides = [1, 1]} : vector<8x128xf32> to vector<8x32xf32>
    %181 = math.tanh %180 : vector<8x32xf32>
    %182 = vector.extract_strided_slice %179 {offsets = [0, 0], sizes = [8, 32], strides = [1, 1]} : vector<8x96xf32> to vector<8x32xf32>
    %183 = vector.extract_strided_slice %179 {offsets = [0, 32], sizes = [8, 32], strides = [1, 1]} : vector<8x96xf32> to vector<8x32xf32>
    %184 = vector.extract_strided_slice %179 {offsets = [0, 64], sizes = [8, 32], strides = [1, 1]} : vector<8x96xf32> to vector<8x32xf32>
    %185 = arith.mulf %183, %148 : vector<8x32xf32>
    %186 = arith.mulf %182, %181 : vector<8x32xf32>
    %187 = arith.addf %185, %186 : vector<8x32xf32>
    %188 = math.tanh %187 : vector<8x32xf32>
    %189 = arith.mulf %184, %188 : vector<8x32xf32>
    %cst_35 = arith.constant dense<0.000000e+00> : vector<8x128xf32>
    %190 = tpu.matmul %189, %3, %cst_35 {dimension_numbers = #tpu.dot_dimension_numbers<[1], [0], [0], [1], [0, 0, 1, 1], [], []>} : vector<8x32xf32>, vector<32x128xf32>, vector<8x128xf32> -> vector<8x128xf32>
    %cst_36 = arith.constant dense<0.000000e+00> : vector<8x128xf32>
    %191 = tpu.matmul %170, %4, %cst_36 {dimension_numbers = #tpu.dot_dimension_numbers<[1], [0], [0], [1], [0, 0, 1, 1], [], []>} : vector<8x32xf32>, vector<32x128xf32>, vector<8x128xf32> -> vector<8x128xf32>
    %192 = arith.addf %190, %191 : vector<8x128xf32>
    %193 = arith.addf %192, %5 : vector<8x128xf32>
    %194 = vector.extract_strided_slice %193 {offsets = [0, 0], sizes = [8, 96], strides = [1, 1]} : vector<8x128xf32> to vector<8x96xf32>
    %195 = arith.negf %194 : vector<8x96xf32>
    %196 = math.exp %195 : vector<8x96xf32>
    %cst_37 = arith.constant 1.000000e+00 : f32
    %197 = vector.broadcast %cst_37 : f32 to vector<8x96xf32>
    %198 = arith.addf %197, %196 : vector<8x96xf32>
    %199 = arith.divf %197, %198 : vector<8x96xf32>
    %200 = vector.extract_strided_slice %193 {offsets = [0, 96], sizes = [8, 32], strides = [1, 1]} : vector<8x128xf32> to vector<8x32xf32>
    %201 = math.tanh %200 : vector<8x32xf32>
    %202 = vector.extract_strided_slice %199 {offsets = [0, 0], sizes = [8, 32], strides = [1, 1]} : vector<8x96xf32> to vector<8x32xf32>
    %203 = vector.extract_strided_slice %199 {offsets = [0, 32], sizes = [8, 32], strides = [1, 1]} : vector<8x96xf32> to vector<8x32xf32>
    %204 = vector.extract_strided_slice %199 {offsets = [0, 64], sizes = [8, 32], strides = [1, 1]} : vector<8x96xf32> to vector<8x32xf32>
    %205 = arith.mulf %203, %168 : vector<8x32xf32>
    %206 = arith.mulf %202, %201 : vector<8x32xf32>
    %207 = arith.addf %205, %206 : vector<8x32xf32>
    %208 = math.tanh %207 : vector<8x32xf32>
    %209 = arith.mulf %204, %208 : vector<8x32xf32>
    %210 = vector.extract_strided_slice %13 {offsets = [40, 0], sizes = [8, 128], strides = [1, 1]} : vector<64x128xf32> to vector<8x128xf32>
    %cst_38 = arith.constant dense<0.000000e+00> : vector<8x128xf32>
    %211 = tpu.matmul %189, %1, %cst_38 {dimension_numbers = #tpu.dot_dimension_numbers<[1], [0], [0], [1], [0, 0, 1, 1], [], []>} : vector<8x32xf32>, vector<32x128xf32>, vector<8x128xf32> -> vector<8x128xf32>
    %212 = arith.addf %210, %211 : vector<8x128xf32>
    %213 = vector.extract_strided_slice %212 {offsets = [0, 0], sizes = [8, 96], strides = [1, 1]} : vector<8x128xf32> to vector<8x96xf32>
    %214 = arith.negf %213 : vector<8x96xf32>
    %215 = math.exp %214 : vector<8x96xf32>
    %cst_39 = arith.constant 1.000000e+00 : f32
    %216 = vector.broadcast %cst_39 : f32 to vector<8x96xf32>
    %217 = arith.addf %216, %215 : vector<8x96xf32>
    %218 = arith.divf %216, %217 : vector<8x96xf32>
    %219 = vector.extract_strided_slice %212 {offsets = [0, 96], sizes = [8, 32], strides = [1, 1]} : vector<8x128xf32> to vector<8x32xf32>
    %220 = math.tanh %219 : vector<8x32xf32>
    %221 = vector.extract_strided_slice %218 {offsets = [0, 0], sizes = [8, 32], strides = [1, 1]} : vector<8x96xf32> to vector<8x32xf32>
    %222 = vector.extract_strided_slice %218 {offsets = [0, 32], sizes = [8, 32], strides = [1, 1]} : vector<8x96xf32> to vector<8x32xf32>
    %223 = vector.extract_strided_slice %218 {offsets = [0, 64], sizes = [8, 32], strides = [1, 1]} : vector<8x96xf32> to vector<8x32xf32>
    %224 = arith.mulf %222, %187 : vector<8x32xf32>
    %225 = arith.mulf %221, %220 : vector<8x32xf32>
    %226 = arith.addf %224, %225 : vector<8x32xf32>
    %227 = math.tanh %226 : vector<8x32xf32>
    %228 = arith.mulf %223, %227 : vector<8x32xf32>
    %cst_40 = arith.constant dense<0.000000e+00> : vector<8x128xf32>
    %229 = tpu.matmul %228, %3, %cst_40 {dimension_numbers = #tpu.dot_dimension_numbers<[1], [0], [0], [1], [0, 0, 1, 1], [], []>} : vector<8x32xf32>, vector<32x128xf32>, vector<8x128xf32> -> vector<8x128xf32>
    %cst_41 = arith.constant dense<0.000000e+00> : vector<8x128xf32>
    %230 = tpu.matmul %209, %4, %cst_41 {dimension_numbers = #tpu.dot_dimension_numbers<[1], [0], [0], [1], [0, 0, 1, 1], [], []>} : vector<8x32xf32>, vector<32x128xf32>, vector<8x128xf32> -> vector<8x128xf32>
    %231 = arith.addf %229, %230 : vector<8x128xf32>
    %232 = arith.addf %231, %5 : vector<8x128xf32>
    %233 = vector.extract_strided_slice %232 {offsets = [0, 0], sizes = [8, 96], strides = [1, 1]} : vector<8x128xf32> to vector<8x96xf32>
    %234 = arith.negf %233 : vector<8x96xf32>
    %235 = math.exp %234 : vector<8x96xf32>
    %cst_42 = arith.constant 1.000000e+00 : f32
    %236 = vector.broadcast %cst_42 : f32 to vector<8x96xf32>
    %237 = arith.addf %236, %235 : vector<8x96xf32>
    %238 = arith.divf %236, %237 : vector<8x96xf32>
    %239 = vector.extract_strided_slice %232 {offsets = [0, 96], sizes = [8, 32], strides = [1, 1]} : vector<8x128xf32> to vector<8x32xf32>
    %240 = math.tanh %239 : vector<8x32xf32>
    %241 = vector.extract_strided_slice %238 {offsets = [0, 0], sizes = [8, 32], strides = [1, 1]} : vector<8x96xf32> to vector<8x32xf32>
    %242 = vector.extract_strided_slice %238 {offsets = [0, 32], sizes = [8, 32], strides = [1, 1]} : vector<8x96xf32> to vector<8x32xf32>
    %243 = vector.extract_strided_slice %238 {offsets = [0, 64], sizes = [8, 32], strides = [1, 1]} : vector<8x96xf32> to vector<8x32xf32>
    %244 = arith.mulf %242, %207 : vector<8x32xf32>
    %245 = arith.mulf %241, %240 : vector<8x32xf32>
    %246 = arith.addf %244, %245 : vector<8x32xf32>
    %247 = math.tanh %246 : vector<8x32xf32>
    %248 = arith.mulf %243, %247 : vector<8x32xf32>
    %249 = vector.extract_strided_slice %13 {offsets = [48, 0], sizes = [8, 128], strides = [1, 1]} : vector<64x128xf32> to vector<8x128xf32>
    %cst_43 = arith.constant dense<0.000000e+00> : vector<8x128xf32>
    %250 = tpu.matmul %228, %1, %cst_43 {dimension_numbers = #tpu.dot_dimension_numbers<[1], [0], [0], [1], [0, 0, 1, 1], [], []>} : vector<8x32xf32>, vector<32x128xf32>, vector<8x128xf32> -> vector<8x128xf32>
    %251 = arith.addf %249, %250 : vector<8x128xf32>
    %252 = vector.extract_strided_slice %251 {offsets = [0, 0], sizes = [8, 96], strides = [1, 1]} : vector<8x128xf32> to vector<8x96xf32>
    %253 = arith.negf %252 : vector<8x96xf32>
    %254 = math.exp %253 : vector<8x96xf32>
    %cst_44 = arith.constant 1.000000e+00 : f32
    %255 = vector.broadcast %cst_44 : f32 to vector<8x96xf32>
    %256 = arith.addf %255, %254 : vector<8x96xf32>
    %257 = arith.divf %255, %256 : vector<8x96xf32>
    %258 = vector.extract_strided_slice %251 {offsets = [0, 96], sizes = [8, 32], strides = [1, 1]} : vector<8x128xf32> to vector<8x32xf32>
    %259 = math.tanh %258 : vector<8x32xf32>
    %260 = vector.extract_strided_slice %257 {offsets = [0, 0], sizes = [8, 32], strides = [1, 1]} : vector<8x96xf32> to vector<8x32xf32>
    %261 = vector.extract_strided_slice %257 {offsets = [0, 32], sizes = [8, 32], strides = [1, 1]} : vector<8x96xf32> to vector<8x32xf32>
    %262 = vector.extract_strided_slice %257 {offsets = [0, 64], sizes = [8, 32], strides = [1, 1]} : vector<8x96xf32> to vector<8x32xf32>
    %263 = arith.mulf %261, %226 : vector<8x32xf32>
    %264 = arith.mulf %260, %259 : vector<8x32xf32>
    %265 = arith.addf %263, %264 : vector<8x32xf32>
    %266 = math.tanh %265 : vector<8x32xf32>
    %267 = arith.mulf %262, %266 : vector<8x32xf32>
    %cst_45 = arith.constant dense<0.000000e+00> : vector<8x128xf32>
    %268 = tpu.matmul %267, %3, %cst_45 {dimension_numbers = #tpu.dot_dimension_numbers<[1], [0], [0], [1], [0, 0, 1, 1], [], []>} : vector<8x32xf32>, vector<32x128xf32>, vector<8x128xf32> -> vector<8x128xf32>
    %cst_46 = arith.constant dense<0.000000e+00> : vector<8x128xf32>
    %269 = tpu.matmul %248, %4, %cst_46 {dimension_numbers = #tpu.dot_dimension_numbers<[1], [0], [0], [1], [0, 0, 1, 1], [], []>} : vector<8x32xf32>, vector<32x128xf32>, vector<8x128xf32> -> vector<8x128xf32>
    %270 = arith.addf %268, %269 : vector<8x128xf32>
    %271 = arith.addf %270, %5 : vector<8x128xf32>
    %272 = vector.extract_strided_slice %271 {offsets = [0, 0], sizes = [8, 96], strides = [1, 1]} : vector<8x128xf32> to vector<8x96xf32>
    %273 = arith.negf %272 : vector<8x96xf32>
    %274 = math.exp %273 : vector<8x96xf32>
    %cst_47 = arith.constant 1.000000e+00 : f32
    %275 = vector.broadcast %cst_47 : f32 to vector<8x96xf32>
    %276 = arith.addf %275, %274 : vector<8x96xf32>
    %277 = arith.divf %275, %276 : vector<8x96xf32>
    %278 = vector.extract_strided_slice %271 {offsets = [0, 96], sizes = [8, 32], strides = [1, 1]} : vector<8x128xf32> to vector<8x32xf32>
    %279 = math.tanh %278 : vector<8x32xf32>
    %280 = vector.extract_strided_slice %277 {offsets = [0, 0], sizes = [8, 32], strides = [1, 1]} : vector<8x96xf32> to vector<8x32xf32>
    %281 = vector.extract_strided_slice %277 {offsets = [0, 32], sizes = [8, 32], strides = [1, 1]} : vector<8x96xf32> to vector<8x32xf32>
    %282 = vector.extract_strided_slice %277 {offsets = [0, 64], sizes = [8, 32], strides = [1, 1]} : vector<8x96xf32> to vector<8x32xf32>
    %283 = arith.mulf %281, %246 : vector<8x32xf32>
    %284 = arith.mulf %280, %279 : vector<8x32xf32>
    %285 = arith.addf %283, %284 : vector<8x32xf32>
    %286 = math.tanh %285 : vector<8x32xf32>
    %287 = arith.mulf %282, %286 : vector<8x32xf32>
    %288 = vector.extract_strided_slice %13 {offsets = [56, 0], sizes = [8, 128], strides = [1, 1]} : vector<64x128xf32> to vector<8x128xf32>
    %cst_48 = arith.constant dense<0.000000e+00> : vector<8x128xf32>
    %289 = tpu.matmul %267, %1, %cst_48 {dimension_numbers = #tpu.dot_dimension_numbers<[1], [0], [0], [1], [0, 0, 1, 1], [], []>} : vector<8x32xf32>, vector<32x128xf32>, vector<8x128xf32> -> vector<8x128xf32>
    %290 = arith.addf %288, %289 : vector<8x128xf32>
    %291 = vector.extract_strided_slice %290 {offsets = [0, 0], sizes = [8, 96], strides = [1, 1]} : vector<8x128xf32> to vector<8x96xf32>
    %292 = arith.negf %291 : vector<8x96xf32>
    %293 = math.exp %292 : vector<8x96xf32>
    %cst_49 = arith.constant 1.000000e+00 : f32
    %294 = vector.broadcast %cst_49 : f32 to vector<8x96xf32>
    %295 = arith.addf %294, %293 : vector<8x96xf32>
    %296 = arith.divf %294, %295 : vector<8x96xf32>
    %297 = vector.extract_strided_slice %290 {offsets = [0, 96], sizes = [8, 32], strides = [1, 1]} : vector<8x128xf32> to vector<8x32xf32>
    %298 = math.tanh %297 : vector<8x32xf32>
    %299 = vector.extract_strided_slice %296 {offsets = [0, 0], sizes = [8, 32], strides = [1, 1]} : vector<8x96xf32> to vector<8x32xf32>
    %300 = vector.extract_strided_slice %296 {offsets = [0, 32], sizes = [8, 32], strides = [1, 1]} : vector<8x96xf32> to vector<8x32xf32>
    %301 = vector.extract_strided_slice %296 {offsets = [0, 64], sizes = [8, 32], strides = [1, 1]} : vector<8x96xf32> to vector<8x32xf32>
    %302 = arith.mulf %300, %265 : vector<8x32xf32>
    %303 = arith.mulf %299, %298 : vector<8x32xf32>
    %304 = arith.addf %302, %303 : vector<8x32xf32>
    %305 = math.tanh %304 : vector<8x32xf32>
    %306 = arith.mulf %301, %305 : vector<8x32xf32>
    %cst_50 = arith.constant dense<0.000000e+00> : vector<8x128xf32>
    %307 = tpu.matmul %306, %3, %cst_50 {dimension_numbers = #tpu.dot_dimension_numbers<[1], [0], [0], [1], [0, 0, 1, 1], [], []>} : vector<8x32xf32>, vector<32x128xf32>, vector<8x128xf32> -> vector<8x128xf32>
    %cst_51 = arith.constant dense<0.000000e+00> : vector<8x128xf32>
    %308 = tpu.matmul %287, %4, %cst_51 {dimension_numbers = #tpu.dot_dimension_numbers<[1], [0], [0], [1], [0, 0, 1, 1], [], []>} : vector<8x32xf32>, vector<32x128xf32>, vector<8x128xf32> -> vector<8x128xf32>
    %309 = arith.addf %307, %308 : vector<8x128xf32>
    %310 = arith.addf %309, %5 : vector<8x128xf32>
    %311 = vector.extract_strided_slice %310 {offsets = [0, 0], sizes = [8, 96], strides = [1, 1]} : vector<8x128xf32> to vector<8x96xf32>
    %312 = arith.negf %311 : vector<8x96xf32>
    %313 = math.exp %312 : vector<8x96xf32>
    %cst_52 = arith.constant 1.000000e+00 : f32
    %314 = vector.broadcast %cst_52 : f32 to vector<8x96xf32>
    %315 = arith.addf %314, %313 : vector<8x96xf32>
    %316 = arith.divf %314, %315 : vector<8x96xf32>
    %317 = vector.extract_strided_slice %310 {offsets = [0, 96], sizes = [8, 32], strides = [1, 1]} : vector<8x128xf32> to vector<8x32xf32>
    %318 = math.tanh %317 : vector<8x32xf32>
    %319 = vector.extract_strided_slice %316 {offsets = [0, 0], sizes = [8, 32], strides = [1, 1]} : vector<8x96xf32> to vector<8x32xf32>
    %320 = vector.extract_strided_slice %316 {offsets = [0, 32], sizes = [8, 32], strides = [1, 1]} : vector<8x96xf32> to vector<8x32xf32>
    %321 = vector.extract_strided_slice %316 {offsets = [0, 64], sizes = [8, 32], strides = [1, 1]} : vector<8x96xf32> to vector<8x32xf32>
    %322 = arith.mulf %320, %285 : vector<8x32xf32>
    %323 = arith.mulf %319, %318 : vector<8x32xf32>
    %324 = arith.addf %322, %323 : vector<8x32xf32>
    %325 = math.tanh %324 : vector<8x32xf32>
    %326 = arith.mulf %321, %325 : vector<8x32xf32>
    %cst_53 = arith.constant dense<0.000000e+00> : vector<8x128xf32>
    %327 = tpu.matmul %326, %6, %cst_53 {dimension_numbers = #tpu.dot_dimension_numbers<[1], [0], [0], [1], [0, 0, 1, 1], [], []>} : vector<8x32xf32>, vector<32x128xf32>, vector<8x128xf32> -> vector<8x128xf32>
    %328 = arith.addf %327, %7 : vector<8x128xf32>
    %cst_54 = arith.constant 0.000000e+00 : f32
    %329 = vector.broadcast %cst_54 : f32 to vector<8x128xf32>
    %330 = arith.maximumf %328, %329 : vector<8x128xf32>
    %331 = vector.extract_strided_slice %330 {offsets = [0, 0], sizes = [8, 16], strides = [1, 1]} : vector<8x128xf32> to vector<8x16xf32>
    %cst_55 = arith.constant dense<0.000000e+00> : vector<8x128xf32>
    %332 = tpu.matmul %331, %8, %cst_55 {dimension_numbers = #tpu.dot_dimension_numbers<[1], [0], [0], [1], [0, 0, 1, 1], [], []>} : vector<8x16xf32>, vector<16x128xf32>, vector<8x128xf32> -> vector<8x128xf32>
    %333 = arith.addf %332, %9 : vector<8x128xf32>
    %334 = vector.extract_strided_slice %333 {offsets = [0, 0], sizes = [8, 2], strides = [1, 1]} : vector<8x128xf32> to vector<8x2xf32>
    %c0_56 = arith.constant 0 : index
    %c0_57 = arith.constant 0 : index
    %335 = vector.load %arg2[%c0_56, %c0_57] : memref<8x2xf32, #tpu.memory_space<vmem>>, vector<8x2xf32>
    tpu.vector_store %arg2[%c0_56, %c0_57], %334 {strides = array<i32>} : memref<8x2xf32, #tpu.memory_space<vmem>>, vector<8x2xf32>,
    return
  }
}

</mosaic_0001>

<bundles_post_ra>
// kernel: epilepsy_lstm_forward.1
= control target key start
LH: loop header
LB: loop body
LE: loop exit
PB: predicated region body
PF: predicated region fallthrough
CT: control target
= control target key end

     0   :  { %vm44_vm0 = vcmask 130048   ;;  %v1516_v7 = vmov 0.0   ;;  %s1517_s25 = smov 32   ;;  %s1518_s16 = smov 64   ;;  %vm110_vm5 = vcmask 261120   ;;  %s1937_s1 = inlined_call_operand.vmem [shape: f32[192,128], index: 1, kind: input, shape index: {}]   ;;  %s1938_s0 = inlined_call_operand.vmem [shape: f32[64,16], index: 0, kind: input, shape index: {}]   ;;  %s1939_s2 = inlined_call_operand.vmem [shape: f32[8,2], index: 2, kind: output, shape index: {}]  }
   0x1   :  { %v1537_v0 = vld [vmem:[%s1937_s1 + $0x28] sm:$0xff]  ;;  %v1545_v2 = vld [vmem:[%s1937_s1 + $0x20] sm:$0xff]  ;;  %v1557_v5 = vld [vmem:[%s1937_s1 + $0x18] sm:$0xff] }
   0x2   :  { %v12_v1 = vld [vmem:[%s1937_s1 + $0x8] sm:$0xff]  ;;  %126 = vmatpush.msra.mxu1 %v1537_v0  ;;  %v11_v3 = vld [vmem:[%s1937_s1] sm:$0xff]  ;;  %v1564_v6 = vld [vmem:[%s1937_s1 + $0x10] sm:$0xff] }
   0x3   :  { %83 = vmatpush.msra.mxu0 %v12_v1  ;;  %v35_v4 = vld [vmem:[%s1938_s0] sm:$0xff]  ;;  %v1580_v8 = vld [vmem:[%s1937_s1 + $0x30] ss:$0 sm:$0xff]  ;;  %v1602_v35 = vld [vmem:[%s1937_s1 + $0x68] sm:$0xff] }
   0x4   :  { %127 = vmatpush.msra.mxu1 %v1545_v2  ;;  %v1592_v33 = vld [vmem:[%s1937_s1 + $0x70] sm:$0xff]  ;;  %v1609_v36 = vld [vmem:[%s1937_s1 + $0x48] sm:$0xff]  ;;  %v1614_v37 = vld [vmem:[%s1937_s1 + $0x60] sm:$0xff] }
   0x5   :  { %84 = vmatpush.msra.mxu0 %v11_v3  ;;  %v1597_v34 = vld [vmem:[%s1937_s1 + $0x50] sm:$0xff]  ;;  %184 = vmatpush.msra.mxu2 %v1592_v33  ;;  %v1619_v38 = vld [vmem:[%s1937_s1 + $0x40] sm:$0xff]  ;;  %v36_v39 = vld [vmem:[%s1938_s0 + $0x8] sm:$0xff] }
   0x6   :  { %1332 = vmatmul.msk.f32.vlgmr.msra.gmra.mxu0 %vm44_vm0, %v35_v4  ;;  %128 = vmatpush.msra.mxu1 %v1557_v5  ;;  %v1630_v40 = vld [vmem:[%s1937_s1 + $0x58] sm:$0xff] }
   0x7   :  { %209 = vmatpush.msra.mxu3 %v1597_v34  ;;  %185 = vmatpush.msra.mxu2 %v1602_v35  ;;  %v1635_v41 = vld [vmem:[%s1937_s1 + $0x38] sm:$0xff] }
   0x8   :  { %129 = vmatpush.msra.mxu1 %v1564_v6  ;;  %v1668_v46 = vld [vmem:[%s1937_s1 + $0x78] sm:$0xff] }
   0x9   :  { %130 = vmatmul.f32.vlgmr.msra.gmra.mxu1 %v1516_v7  ;;  %210 = vmatpush.msra.mxu3 %v1609_v36 }
   0xa   :  { %267 = vmatpush.msrb.mxu1 %v1537_v0  ;;  %186 = vmatpush.msra.mxu2 %v1614_v37 }
   0xb   :  { %211 = vmatpush.msra.mxu3 %v1619_v38 }
   0xc   :  { %268 = vmatpush.msrb.mxu1 %v1545_v2  ;;  %187 = vmatpush.msra.mxu2 %v1630_v40 }
   0xd   :  { %212 = vmatpush.msra.mxu3 %v1635_v41  ;;  %188 = vmatmul.f32.vlgmr.msra.gmra.mxu2 %v1516_v7 }
   0xe   :  { %269 = vmatpush.msrb.mxu1 %v1557_v5  ;;  %1333 = vmatmul.msk.f32.gmra.mxu0 %vm44_vm0, %v36_v39 }
   0xf   :  { %355 = vmatpush.msrb.mxu3 %v1597_v34  ;;  %330 = vmatpush.msrb.mxu2 %v1592_v33 }
  0x10   :  { %270 = vmatpush.msrb.mxu1 %v1564_v6 }
  0x11   :  { %356 = vmatpush.msrb.mxu3 %v1609_v36  ;;  %331 = vmatpush.msrb.mxu2 %v1602_v35 }
  0x12   :  { %413 = vmatpush.msra.mxu1 %v1537_v0 }
  0x13   :  { %357 = vmatpush.msrb.mxu3 %v1619_v38  ;;  %332 = vmatpush.msrb.mxu2 %v1614_v37 }
  0x14   :  { %414 = vmatpush.msra.mxu1 %v1545_v2 }
  0x15   :  { %358 = vmatpush.msrb.mxu3 %v1635_v41  ;;  %333 = vmatpush.msrb.mxu2 %v1630_v40 }
  0x16   :  { %415 = vmatpush.msra.mxu1 %v1557_v5 }
  0x17   :  { %476 = vmatpush.msra.mxu2 %v1592_v33 }
  0x18   :  { %416 = vmatpush.msra.mxu1 %v1564_v6 }
  0x19   :  { %477 = vmatpush.msra.mxu2 %v1602_v35 }
  0x1b   :  { %478 = vmatpush.msra.mxu2 %v1614_v37 }
  0x1d   :  { %479 = vmatpush.msra.mxu2 %v1630_v40 }
  0x83   :  { %v86_v9 = vpop.f32.mrf.mxu0 }
  0x84   :  { %v87_v10 = vadd.f32 %v1580_v8, %v86_v9 }
  0x86   :  { %v131_v11 = vpop.f32.mrf.mxu1 }
  0x87   :  { %v134_v12 = vadd.f32 %v131_v11, %v87_v10 }
  0x89   :  { %1384 = vtanh.f32 %v134_v12  ;;  %v1340_v14 = vmul.f32 -1.442695, %v134_v12 }
  0x8b   :  { %1386 = vpow2.f32 %v1340_v14  ;;  %v89_v49 = vpop.f32.mrf.mxu0 }
  0x8c   :  { %v90_v51 = vadd.f32 %v1580_v8, %v89_v49 }
  0x8f   :  { %v1385_v13 = vpop.eup %1384 }
  0x90   :  { %157 = vrot.lane.b32.xlu0 %v1385_v13, %s1517_s25  ;;  %v189_v45 = vpop.f32.mrf.mxu2 }
  0x91   :  { %v1387_v15 = vpop.eup %1386 }
  0x92   :  { %v138_v16 = vadd.f32 1.0, %v1387_v15 }
  0x94   :  { %1388 = vrcp.f32 %v138_v16  ;;  %v150_v22 = vand.u32 2147483648, %v138_v16  ;;  %vm144_vm2 = vweird.f32 %v138_v16  ;;  %v148_v23 = vand.u32 2147483647, %v138_v16 }
  0x96   :  { %v151_v25 = vor.u32 1.1754944e-38, %v150_v22  ;;  %vm149_vm4 = vcmp.eq.f32.partialorder %v148_v23, 8.507059e+37 }
  0x9a   :  { %v1389_v17 = vpop.eup %1388 }
  0x9b   :  { %v140_v18 = vmul.f32 %v1389_v17, %v138_v16  ;;  %vm145_vm1 = vweird.f32 %v1389_v17 }
  0x9c   :  { %vm146_vm3 = vmor %vm144_vm2, %vm145_vm1 }
  0x9d   :  { %v141_v19 = vsub.f32 1.0, %v140_v18 }
  0x9f   :  { %v142_v20 = vmul.f32 %v1389_v17, %v141_v19 }
  0xa1   :  { %v143_v21 = vadd.f32 %v1389_v17, %v142_v20 }
  0xa3   :  { %v147_v24 = vsel %vm146_vm3, %v1389_v17, %v143_v21 }
  0xa4   :  { %v152_v27 = vsel %vm149_vm4, %v151_v25, %v147_v24 }
  0xa5   :  { %v155_v29 = vmul.f32 0.0, %v152_v27 }
 0x102   :  { %v158_v26 = vpop.permute.xlu0 %157 }
 0x103   :  { %v160_v28 = vmul.f32 %v158_v26, %v152_v27 }
 0x105   :  { %162 = vrot.lane.b32.xlu0 %v160_v28, %s1517_s25 }
 0x177   :  { %v163_v30 = vpop.permute.xlu0 %162 }
 0x178   :  { %v1585_v31 = vadd.f32 %v163_v30, %v155_v29 }
 0x17a   :  { %1390 = vtanh.f32 %v1585_v31 }
 0x180   :  { %v1391_v32 = vpop.eup %1390 }
 0x181   :  { %168 = vrot.lane.b32.xlu1 %v1391_v32, %s1517_s25 }
 0x1f3   :  { %v169_v42 = vpop.permute.xlu1 %168 }
 0x1f4   :  { %v171_v43 = vmul.f32 %v169_v42, %v152_v27 }
 0x1f6   :  { %193 = vrot.lane.b32.xlu1 %v171_v43, %s1518_s16 }
 0x268   :  { %v194_v44 = vpop.permute.xlu1 %193 }
 0x269   :  { %1341 = vmatmul.msk.f32.vlgmr.msra.gmra.mxu3 %vm110_vm5, %v194_v44  ;;  %1343 = vmatmul.msk.f32.vlgmr.msrb.gmra.mxu1 %vm110_vm5, %v194_v44 }
 0x26a   :  { %559 = vmatpush.msrb.mxu1 %v1537_v0  ;;  %501 = vmatpush.msra.mxu3 %v1597_v34 }
 0x26c   :  { %560 = vmatpush.msrb.mxu1 %v1545_v2  ;;  %502 = vmatpush.msra.mxu3 %v1609_v36 }
 0x26e   :  { %561 = vmatpush.msrb.mxu1 %v1557_v5  ;;  %503 = vmatpush.msra.mxu3 %v1619_v38 }
 0x270   :  { %562 = vmatpush.msrb.mxu1 %v1564_v6  ;;  %504 = vmatpush.msra.mxu3 %v1635_v41 }
 0x2e6   :  { %v272_v52 = vpop.f32.mrf.mxu1 }
 0x2e7   :  { %v275_v53 = vadd.f32 %v272_v52, %v90_v51 }
 0x2e9   :  { %v1344_v57 = vmul.f32 -1.442695, %v275_v53 }
 0x2ec   :  { %v214_v47 = vpop.f32.mrf.mxu3 }
 0x2ed   :  { %v215_v48 = vadd.f32 %v214_v47, %v189_v45 }
 0x2ef   :  { %v217_v50 = vadd.f32 %v215_v48, %v1668_v46 }
 0x2f1   :  { %1392 = vtanh.f32 %v217_v50  ;;  %v1342_v56 = vmul.f32 -1.442695, %v217_v50 }
 0x2f2   :  { %1394 = vtanh.f32 %v275_v53 }
 0x2f3   :  { %1396 = vpow2.f32 %v1342_v56 }
 0x2f4   :  { %1398 = vpow2.f32 %v1344_v57 }
 0x2f7   :  { %v1393_v54 = vpop.eup %1392 }
 0x2f8   :  { %240 = vrot.lane.b32.xlu2 %v1393_v54, %s1517_s25  ;;  %v1395_v55 = vpop.eup %1394 }
 0x2f9   :  { %v1397_v58 = vpop.eup %1396 }
 0x2fa   :  { %v221_v59 = vadd.f32 1.0, %v1397_v58  ;;  %v1399_v60 = vpop.eup %1398 }
 0x2fb   :  { %v279_v61 = vadd.f32 1.0, %v1399_v60 }
 0x2fc   :  { %1400 = vrcp.f32 %v221_v59  ;;  %v233_v11 = vand.u32 2147483648, %v221_v59  ;;  %vm227_vm7 = vweird.f32 %v221_v59  ;;  %v231_v12 = vand.u32 2147483647, %v221_v59 }
 0x2fd   :  { %1402 = vrcp.f32 %v279_v61  ;;  %v291_v20 = vand.u32 2147483648, %v279_v61  ;;  %vm285_vm11 = vweird.f32 %v279_v61  ;;  %v289_v21 = vand.u32 2147483647, %v279_v61 }
 0x2fe   :  { %v234_v15 = vor.u32 1.1754944e-38, %v233_v11  ;;  %vm232_vm9 = vcmp.eq.f32.partialorder %v231_v12, 8.507059e+37 }
 0x2ff   :  { %v292_v23 = vor.u32 1.1754944e-38, %v291_v20  ;;  %vm290_vm13 = vcmp.eq.f32.partialorder %v289_v21, 8.507059e+37 }
 0x300   :  { %298 = vrot.lane.b32.xlu2 %v1395_v55, %s1517_s25 }
 0x302   :  { %v1401_v62 = vpop.eup %1400 }
 0x303   :  { %v223_v63 = vmul.f32 %v1401_v62, %v221_v59  ;;  %v1403_v3 = vpop.eup %1402  ;;  %vm228_vm6 = vweird.f32 %v1401_v62 }
 0x304   :  { %v281_v7 = vmul.f32 %v1403_v3, %v279_v61  ;;  %vm229_vm8 = vmor %vm227_vm7, %vm228_vm6  ;;  %vm286_vm10 = vweird.f32 %v1403_v3 }
 0x305   :  { %v224_v1 = vsub.f32 1.0, %v223_v63  ;;  %vm287_vm12 = vmor %vm285_vm11, %vm286_vm10 }
 0x306   :  { %v282_v10 = vsub.f32 1.0, %v281_v7 }
 0x307   :  { %v225_v4 = vmul.f32 %v1401_v62, %v224_v1 }
 0x308   :  { %v283_v14 = vmul.f32 %v1403_v3, %v282_v10 }
 0x309   :  { %v226_v9 = vadd.f32 %v1401_v62, %v225_v4 }
 0x30a   :  { %v284_v19 = vadd.f32 %v1403_v3, %v283_v14 }
 0x30b   :  { %v230_v13 = vsel %vm229_vm8, %v1401_v62, %v226_v9 }
 0x30c   :  { %v235_v17 = vsel %vm232_vm9, %v234_v15, %v230_v13  ;;  %v288_v22 = vsel %vm287_vm12, %v1403_v3, %v284_v19 }
 0x30d   :  { %v293_v24 = vsel %vm290_vm13, %v292_v23, %v288_v22  ;;  %v238_v27 = vmul.f32 0.0, %v235_v17 }
 0x30e   :  { %v296_v30 = vmul.f32 %v293_v24, %v1585_v31  ;;  %v37_v31 = vld [vmem:[%s1938_s0 + $0x10] sm:$0xff] }
 0x30f   :  { %1334 = vmatmul.msk.f32.gmra.mxu0 %vm44_vm0, %v37_v31 }
 0x352   :  { %v241_v16 = vpop.permute.xlu2 %240 }
 0x353   :  { %v243_v18 = vmul.f32 %v241_v16, %v235_v17 }
 0x355   :  { %245 = vrot.lane.b32.xlu0 %v243_v18, %s1517_s25 }
 0x35a   :  { %v299_v25 = vpop.permute.xlu2 %298 }
 0x35b   :  { %v301_v26 = vmul.f32 %v299_v25, %v293_v24 }
 0x35d   :  { %303 = vrot.lane.b32.xlu1 %v301_v26, %s1517_s25 }
 0x38c   :  { %v92_v51 = vpop.f32.mrf.mxu0 }
 0x38d   :  { %v93_v52 = vadd.f32 %v1580_v8, %v92_v51 }
 0x3c7   :  { %v246_v28 = vpop.permute.xlu0 %245 }
 0x3c8   :  { %v1676_v29 = vadd.f32 %v246_v28, %v238_v27 }
 0x3ca   :  { %1404 = vtanh.f32 %v1676_v29 }
 0x3cf   :  { %v304_v32 = vpop.permute.xlu1 %303 }
 0x3d0   :  { %v1405_v39 = vpop.eup %1404  ;;  %v1680_v42 = vadd.f32 %v304_v32, %v296_v30 }
 0x3d1   :  { %251 = vrot.lane.b32.xlu2 %v1405_v39, %s1517_s25 }
 0x3d2   :  { %1406 = vtanh.f32 %v1680_v42 }
 0x3d8   :  { %v1407_v43 = vpop.eup %1406 }
 0x3d9   :  { %309 = vrot.lane.b32.xlu0 %v1407_v43, %s1517_s25 }
 0x42b   :  { %v252_v44 = vpop.permute.xlu2 %251 }
 0x42c   :  { %v254_v45 = vmul.f32 %v252_v44, %v235_v17 }
 0x42e   :  { %314 = vrot.lane.b32.xlu1 %v254_v45, %s1518_s16 }
 0x44b   :  { %v310_v47 = vpop.permute.xlu0 %309 }
 0x44c   :  { %v312_v48 = vmul.f32 %v310_v47, %v293_v24 }
 0x44e   :  { %339 = vrot.lane.b32.xlu2 %v312_v48, %s1518_s16 }
 0x4a0   :  { %v315_v49 = vpop.permute.xlu1 %314 }
 0x4a1   :  { %1345 = vmatmul.msk.f32.vlgmr.msrb.gmra.mxu2 %vm110_vm5, %v315_v49 }
 0x4a2   :  { %622 = vmatpush.msrb.mxu2 %v1592_v33 }
 0x4a4   :  { %623 = vmatpush.msrb.mxu2 %v1602_v35 }
 0x4a6   :  { %624 = vmatpush.msrb.mxu2 %v1614_v37 }
 0x4a8   :  { %v340_v50 = vpop.permute.xlu2 %339  ;;  %625 = vmatpush.msrb.mxu2 %v1630_v40 }
 0x4a9   :  { %1346 = vmatmul.msk.f32.vlgmr.msrb.gmra.mxu3 %vm110_vm5, %v340_v50  ;;  %1348 = vmatmul.msk.f32.vlgmr.msra.gmra.mxu1 %vm110_vm5, %v340_v50 }
 0x4aa   :  { %647 = vmatpush.msrb.mxu3 %v1597_v34  ;;  %705 = vmatpush.msra.mxu1 %v1537_v0 }
 0x4ac   :  { %648 = vmatpush.msrb.mxu3 %v1609_v36  ;;  %706 = vmatpush.msra.mxu1 %v1545_v2 }
 0x4ae   :  { %649 = vmatpush.msrb.mxu3 %v1619_v38  ;;  %707 = vmatpush.msra.mxu1 %v1557_v5 }
 0x4b0   :  { %650 = vmatpush.msrb.mxu3 %v1635_v41  ;;  %708 = vmatpush.msra.mxu1 %v1564_v6 }
 0x524   :  { %v335_v55 = vpop.f32.mrf.mxu2 }
 0x526   :  { %v418_v53 = vpop.f32.mrf.mxu1 }
 0x527   :  { %v421_v54 = vadd.f32 %v418_v53, %v93_v52 }
 0x529   :  { %1408 = vtanh.f32 %v421_v54  ;;  %v1349_v61 = vmul.f32 -1.442695, %v421_v54 }
 0x52c   :  { %v360_v56 = vpop.f32.mrf.mxu3 }
 0x52d   :  { %v361_v57 = vadd.f32 %v360_v56, %v335_v55 }
 0x52f   :  { %v1409_v58 = vpop.eup %1408  ;;  %v363_v59 = vadd.f32 %v361_v57, %v1668_v46 }
 0x530   :  { %444 = vrot.lane.b32.xlu1 %v1409_v58, %s1517_s25 }
 0x531   :  { %1410 = vtanh.f32 %v363_v59  ;;  %v1347_v62 = vmul.f32 -1.442695, %v363_v59 }
 0x532   :  { %1412 = vpow2.f32 %v1349_v61 }
 0x533   :  { %1414 = vpow2.f32 %v1347_v62 }
 0x537   :  { %v1411_v60 = vpop.eup %1410 }
 0x538   :  { %386 = vrot.lane.b32.xlu0 %v1411_v60, %s1517_s25  ;;  %v1413_v63 = vpop.eup %1412 }
 0x539   :  { %v425_v1 = vadd.f32 1.0, %v1413_v63  ;;  %v1415_v3 = vpop.eup %1414 }
 0x53a   :  { %v367_v4 = vadd.f32 1.0, %v1415_v3 }
 0x53b   :  { %1416 = vrcp.f32 %v425_v1  ;;  %v437_v16 = vand.u32 2147483648, %v425_v1  ;;  %vm431_vm15 = vweird.f32 %v425_v1  ;;  %v435_v17 = vand.u32 2147483647, %v425_v1 }
 0x53c   :  { %1418 = vrcp.f32 %v367_v4  ;;  %v379_v25 = vand.u32 2147483648, %v367_v4  ;;  %vm373_vm4 = vweird.f32 %v367_v4  ;;  %v377_v26 = vand.u32 2147483647, %v367_v4 }
 0x53d   :  { %v438_v20 = vor.u32 1.1754944e-38, %v437_v16  ;;  %vm436_vm2 = vcmp.eq.f32.partialorder %v435_v17, 8.507059e+37 }
 0x53e   :  { %v380_v28 = vor.u32 1.1754944e-38, %v379_v25  ;;  %vm378_vm7 = vcmp.eq.f32.partialorder %v377_v26, 8.507059e+37 }
 0x541   :  { %v1417_v7 = vpop.eup %1416 }
 0x542   :  { %v427_v9 = vmul.f32 %v1417_v7, %v425_v1  ;;  %v1419_v11 = vpop.eup %1418  ;;  %vm432_vm14 = vweird.f32 %v1417_v7 }
 0x543   :  { %v369_v13 = vmul.f32 %v1419_v11, %v367_v4  ;;  %vm433_vm1 = vmor %vm431_vm15, %vm432_vm14  ;;  %vm374_vm3 = vweird.f32 %v1419_v11 }
 0x544   :  { %v428_v10 = vsub.f32 1.0, %v427_v9  ;;  %vm375_vm6 = vmor %vm373_vm4, %vm374_vm3 }
 0x545   :  { %v370_v15 = vsub.f32 1.0, %v369_v13 }
 0x546   :  { %v429_v12 = vmul.f32 %v1417_v7, %v428_v10 }
 0x547   :  { %v371_v19 = vmul.f32 %v1419_v11, %v370_v15 }
 0x548   :  { %v430_v14 = vadd.f32 %v1417_v7, %v429_v12 }
 0x549   :  { %v372_v24 = vadd.f32 %v1419_v11, %v371_v19 }
 0x54a   :  { %v434_v18 = vsel %vm433_vm1, %v1417_v7, %v430_v14 }
 0x54b   :  { %v439_v22 = vsel %vm436_vm2, %v438_v20, %v434_v18  ;;  %v376_v27 = vsel %vm375_vm6, %v1419_v11, %v372_v24 }
 0x54c   :  { %v381_v32 = vsel %vm378_vm7, %v380_v28, %v376_v27  ;;  %v442_v48 = vmul.f32 %v439_v22, %v1680_v42 }
 0x54d   :  { %v384_v43 = vmul.f32 %v381_v32, %v1676_v29  ;;  %v38_v29 = vld [vmem:[%s1938_s0 + $0x18] sm:$0xff] }
 0x54e   :  { %1335 = vmatmul.msk.f32.gmra.mxu0 %vm44_vm0, %v38_v29 }
 0x5a2   :  { %v445_v21 = vpop.permute.xlu1 %444 }
 0x5a3   :  { %v447_v23 = vmul.f32 %v445_v21, %v439_v22 }
 0x5a5   :  { %449 = vrot.lane.b32.xlu0 %v447_v23, %s1517_s25 }
 0x5aa   :  { %v387_v30 = vpop.permute.xlu0 %386 }
 0x5ab   :  { %v389_v39 = vmul.f32 %v387_v30, %v381_v32 }
 0x5ad   :  { %391 = vrot.lane.b32.xlu2 %v389_v39, %s1517_s25 }
 0x5cb   :  { %v95_v56 = vpop.f32.mrf.mxu0 }
 0x5cc   :  { %v96_v57 = vadd.f32 %v1580_v8, %v95_v56 }
 0x607   :  { %v392_v44 = vpop.permute.xlu2 %391 }
 0x608   :  { %v1713_v45 = vadd.f32 %v392_v44, %v384_v43 }
 0x60a   :  { %1420 = vtanh.f32 %v1713_v45 }
 0x610   :  { %v1421_v47 = vpop.eup %1420 }
 0x611   :  { %397 = vrot.lane.b32.xlu1 %v1421_v47, %s1517_s25 }
 0x617   :  { %v450_v31 = vpop.permute.xlu0 %449 }
 0x618   :  { %v1718_v49 = vadd.f32 %v450_v31, %v442_v48 }
 0x61a   :  { %1422 = vtanh.f32 %v1718_v49 }
 0x620   :  { %v1423_v50 = vpop.eup %1422 }
 0x621   :  { %455 = vrot.lane.b32.xlu2 %v1423_v50, %s1517_s25 }
 0x67b   :  { %v456_v51 = vpop.permute.xlu2 %455 }
 0x67c   :  { %v458_v52 = vmul.f32 %v456_v51, %v439_v22 }
 0x67e   :  { %485 = vrot.lane.b32.xlu1 %v458_v52, %s1518_s16 }
 0x683   :  { %v398_v53 = vpop.permute.xlu1 %397 }
 0x684   :  { %v400_v42 = vmul.f32 %v398_v53, %v381_v32 }
 0x686   :  { %460 = vrot.lane.b32.xlu0 %v400_v42, %s1518_s16 }
 0x6f0   :  { %v486_v54 = vpop.permute.xlu1 %485 }
 0x6f1   :  { %1351 = vmatmul.msk.f32.vlgmr.msra.gmra.mxu3 %vm110_vm5, %v486_v54  ;;  %1353 = vmatmul.msk.f32.vlgmr.msrb.gmra.mxu1 %vm110_vm5, %v486_v54 }
 0x6f2   :  { %793 = vmatpush.msra.mxu3 %v1597_v34  ;;  %851 = vmatpush.msrb.mxu1 %v1537_v0 }
 0x6f4   :  { %794 = vmatpush.msra.mxu3 %v1609_v36  ;;  %852 = vmatpush.msrb.mxu1 %v1545_v2 }
 0x6f6   :  { %795 = vmatpush.msra.mxu3 %v1619_v38  ;;  %853 = vmatpush.msrb.mxu1 %v1557_v5 }
 0x6f8   :  { %v461_v55 = vpop.permute.xlu0 %460  ;;  %796 = vmatpush.msra.mxu3 %v1635_v41  ;;  %854 = vmatpush.msrb.mxu1 %v1564_v6 }
 0x6f9   :  { %1350 = vmatmul.msk.f32.vlgmr.msra.gmra.mxu2 %vm110_vm5, %v461_v55 }
 0x6fa   :  { %768 = vmatpush.msra.mxu2 %v1592_v33 }
 0x6fc   :  { %769 = vmatpush.msra.mxu2 %v1602_v35 }
 0x6fe   :  { %770 = vmatpush.msra.mxu2 %v1614_v37 }
 0x700   :  { %771 = vmatpush.msra.mxu2 %v1630_v40 }
 0x76e   :  { %v564_v58 = vpop.f32.mrf.mxu1 }
 0x76f   :  { %v567_v59 = vadd.f32 %v564_v58, %v96_v57 }
 0x771   :  { %1424 = vtanh.f32 %v567_v59  ;;  %v1354_v7 = vmul.f32 -1.442695, %v567_v59 }
 0x774   :  { %v506_v61 = vpop.f32.mrf.mxu3 }
 0x777   :  { %v1425_v60 = vpop.eup %1424 }
 0x778   :  { %590 = vrot.lane.b32.xlu0 %v1425_v60, %s1517_s25 }
 0x77c   :  { %v481_v62 = vpop.f32.mrf.mxu2 }
 0x77d   :  { %v507_v63 = vadd.f32 %v506_v61, %v481_v62 }
 0x77f   :  { %v509_v1 = vadd.f32 %v507_v63, %v1668_v46 }
 0x781   :  { %1426 = vtanh.f32 %v509_v1  ;;  %v1352_v4 = vmul.f32 -1.442695, %v509_v1 }
 0x783   :  { %1428 = vpow2.f32 %v1352_v4 }
 0x784   :  { %1430 = vpow2.f32 %v1354_v7 }
 0x787   :  { %v1427_v3 = vpop.eup %1426 }
 0x788   :  { %532 = vrot.lane.b32.xlu2 %v1427_v3, %s1517_s25 }
 0x789   :  { %v1429_v9 = vpop.eup %1428 }
 0x78a   :  { %v513_v10 = vadd.f32 1.0, %v1429_v9  ;;  %v1431_v11 = vpop.eup %1430 }
 0x78b   :  { %v571_v12 = vadd.f32 1.0, %v1431_v11 }
 0x78c   :  { %1432 = vrcp.f32 %v513_v10  ;;  %v525_v21 = vand.u32 2147483648, %v513_v10  ;;  %vm519_vm9 = vweird.f32 %v513_v10  ;;  %v523_v22 = vand.u32 2147483647, %v513_v10 }
 0x78d   :  { %1434 = vrcp.f32 %v571_v12  ;;  %v583_v32 = vand.u32 2147483648, %v571_v12  ;;  %vm577_vm13 = vweird.f32 %v571_v12  ;;  %v581_v39 = vand.u32 2147483647, %v571_v12 }
 0x78e   :  { %v526_v25 = vor.u32 1.1754944e-38, %v525_v21  ;;  %vm524_vm11 = vcmp.eq.f32.partialorder %v523_v22, 8.507059e+37 }
 0x78f   :  { %v584_v44 = vor.u32 1.1754944e-38, %v583_v32  ;;  %vm582_vm15 = vcmp.eq.f32.partialorder %v581_v39, 8.507059e+37 }
 0x792   :  { %v1433_v13 = vpop.eup %1432 }
 0x793   :  { %v515_v14 = vmul.f32 %v1433_v13, %v513_v10  ;;  %v1435_v16 = vpop.eup %1434  ;;  %vm520_vm8 = vweird.f32 %v1433_v13 }
 0x794   :  { %v573_v18 = vmul.f32 %v1435_v16, %v571_v12  ;;  %vm521_vm10 = vmor %vm519_vm9, %vm520_vm8  ;;  %vm578_vm12 = vweird.f32 %v1435_v16 }
 0x795   :  { %v516_v15 = vsub.f32 1.0, %v515_v14  ;;  %vm579_vm14 = vmor %vm577_vm13, %vm578_vm12 }
 0x796   :  { %v574_v20 = vsub.f32 1.0, %v573_v18 }
 0x797   :  { %v517_v17 = vmul.f32 %v1433_v13, %v516_v15 }
 0x798   :  { %v575_v24 = vmul.f32 %v1435_v16, %v574_v20 }
 0x799   :  { %v518_v19 = vadd.f32 %v1433_v13, %v517_v17 }
 0x79a   :  { %v576_v30 = vadd.f32 %v1435_v16, %v575_v24 }
 0x79b   :  { %v522_v23 = vsel %vm521_vm10, %v1433_v13, %v518_v19 }
 0x79c   :  { %v527_v27 = vsel %vm524_vm11, %v526_v25, %v522_v23  ;;  %v580_v43 = vsel %vm579_vm14, %v1435_v16, %v576_v30 }
 0x79d   :  { %v585_v48 = vsel %vm582_vm15, %v584_v44, %v580_v43  ;;  %v530_v53 = vmul.f32 %v527_v27, %v1713_v45  ;;  %v39_v45 = vld [vmem:[%s1938_s0 + $0x20] sm:$0xff] }
 0x79e   :  { %v588_v50 = vmul.f32 %v585_v48, %v1718_v49  ;;  %1336 = vmatmul.msk.f32.gmra.mxu0 %vm44_vm0, %v39_v45 }
 0x7e2   :  { %v533_v26 = vpop.permute.xlu2 %532 }
 0x7e3   :  { %v535_v28 = vmul.f32 %v533_v26, %v527_v27 }
 0x7e5   :  { %537 = vrot.lane.b32.xlu1 %v535_v28, %s1517_s25 }
 0x7ea   :  { %v591_v47 = vpop.permute.xlu0 %590 }
 0x7eb   :  { %v593_v31 = vmul.f32 %v591_v47, %v585_v48 }
 0x7ed   :  { %595 = vrot.lane.b32.xlu2 %v593_v31, %s1517_s25 }
 0x81b   :  { %v98_v61 = vpop.f32.mrf.mxu0 }
 0x81c   :  { %v99_v62 = vadd.f32 %v1580_v8, %v98_v61 }
 0x847   :  { %v596_v29 = vpop.permute.xlu2 %595 }
 0x848   :  { %v1750_v51 = vadd.f32 %v596_v29, %v588_v50 }
 0x84a   :  { %1436 = vtanh.f32 %v1750_v51 }
 0x850   :  { %v1437_v52 = vpop.eup %1436 }
 0x851   :  { %601 = vrot.lane.b32.xlu1 %v1437_v52, %s1517_s25 }
 0x857   :  { %v538_v42 = vpop.permute.xlu1 %537 }
 0x858   :  { %v1755_v54 = vadd.f32 %v538_v42, %v530_v53 }
 0x85a   :  { %1438 = vtanh.f32 %v1755_v54 }
 0x860   :  { %v1439_v55 = vpop.eup %1438 }
 0x861   :  { %543 = vrot.lane.b32.xlu0 %v1439_v55, %s1517_s25 }
 0x8c3   :  { %v602_v56 = vpop.permute.xlu1 %601 }
 0x8c4   :  { %v604_v49 = vmul.f32 %v602_v56, %v585_v48 }
 0x8c6   :  { %631 = vrot.lane.b32.xlu0 %v604_v49, %s1518_s16 }
 0x8d3   :  { %v544_v57 = vpop.permute.xlu0 %543 }
 0x8d4   :  { %v546_v58 = vmul.f32 %v544_v57, %v527_v27 }
 0x8d6   :  { %606 = vrot.lane.b32.xlu2 %v546_v58, %s1518_s16 }
 0x930   :  { %v607_v59 = vpop.permute.xlu2 %606 }
 0x931   :  { %1355 = vmatmul.msk.f32.vlgmr.msrb.gmra.mxu2 %vm110_vm5, %v607_v59 }
 0x932   :  { %914 = vmatpush.msrb.mxu2 %v1592_v33 }
 0x934   :  { %915 = vmatpush.msrb.mxu2 %v1602_v35 }
 0x936   :  { %916 = vmatpush.msrb.mxu2 %v1614_v37 }
 0x938   :  { %v632_v60 = vpop.permute.xlu0 %631  ;;  %917 = vmatpush.msrb.mxu2 %v1630_v40 }
 0x939   :  { %1356 = vmatmul.msk.f32.vlgmr.msrb.gmra.mxu3 %vm110_vm5, %v632_v60  ;;  %1358 = vmatmul.msk.f32.vlgmr.msra.gmra.mxu1 %vm110_vm5, %v632_v60 }
 0x93a   :  { %939 = vmatpush.msrb.mxu3 %v1597_v34  ;;  %997 = vmatpush.msra.mxu1 %v1537_v0 }
 0x93c   :  { %940 = vmatpush.msrb.mxu3 %v1609_v36  ;;  %998 = vmatpush.msra.mxu1 %v1545_v2 }
 0x93e   :  { %941 = vmatpush.msrb.mxu3 %v1619_v38  ;;  %999 = vmatpush.msra.mxu1 %v1557_v5 }
 0x940   :  { %942 = vmatpush.msrb.mxu3 %v1635_v41  ;;  %1000 = vmatpush.msra.mxu1 %v1564_v6 }
 0x9b4   :  { %v627_v3 = vpop.f32.mrf.mxu2 }
 0x9b6   :  { %v710_v63 = vpop.f32.mrf.mxu1 }
 0x9b7   :  { %v713_v1 = vadd.f32 %v710_v63, %v99_v62 }
 0x9b9   :  { %1440 = vtanh.f32 %v713_v1  ;;  %v1359_v12 = vmul.f32 -1.442695, %v713_v1 }
 0x9bc   :  { %v652_v4 = vpop.f32.mrf.mxu3 }
 0x9bd   :  { %v653_v7 = vadd.f32 %v652_v4, %v627_v3 }
 0x9bf   :  { %v1441_v9 = vpop.eup %1440  ;;  %v655_v10 = vadd.f32 %v653_v7, %v1668_v46 }
 0x9c0   :  { %736 = vrot.lane.b32.xlu2 %v1441_v9, %s1517_s25 }
 0x9c1   :  { %1442 = vtanh.f32 %v655_v10  ;;  %v1357_v18 = vmul.f32 -1.442695, %v655_v10 }
 0x9c2   :  { %1444 = vpow2.f32 %v1359_v12 }
 0x9c7   :  { %v1443_v11 = vpop.eup %1442 }
 0x9c8   :  { %678 = vrot.lane.b32.xlu1 %v1443_v11, %s1517_s25  ;;  %v1445_v13 = vpop.eup %1444 }
 0x9c9   :  { %v717_v14 = vadd.f32 1.0, %v1445_v13 }
 0x9cb   :  { %1446 = vrcp.f32 %v717_v14  ;;  %v729_v21 = vand.u32 2147483648, %v717_v14  ;;  %vm723_vm2 = vweird.f32 %v717_v14  ;;  %v727_v22 = vand.u32 2147483647, %v717_v14 }
 0x9cc   :  { %1448 = vpow2.f32 %v1357_v18 }
 0x9cd   :  { %v730_v25 = vor.u32 1.1754944e-38, %v729_v21  ;;  %vm728_vm4 = vcmp.eq.f32.partialorder %v727_v22, 8.507059e+37 }
 0x9d1   :  { %v1447_v15 = vpop.eup %1446 }
 0x9d2   :  { %v719_v16 = vmul.f32 %v1447_v15, %v717_v14  ;;  %vm724_vm1 = vweird.f32 %v1447_v15  ;;  %v1449_v23 = vpop.eup %1448 }
 0x9d3   :  { %vm725_vm3 = vmor %vm723_vm2, %vm724_vm1  ;;  %v659_v26 = vadd.f32 1.0, %v1449_v23 }
 0x9d4   :  { %v720_v17 = vsub.f32 1.0, %v719_v16 }
 0x9d5   :  { %1450 = vrcp.f32 %v659_v26  ;;  %v671_v48 = vand.u32 2147483648, %v659_v26  ;;  %vm665_vm7 = vweird.f32 %v659_v26  ;;  %v669_v31 = vand.u32 2147483647, %v659_v26 }
 0x9d6   :  { %v721_v19 = vmul.f32 %v1447_v15, %v720_v17 }
 0x9d7   :  { %v672_v29 = vor.u32 1.1754944e-38, %v671_v48  ;;  %vm670_vm9 = vcmp.eq.f32.partialorder %v669_v31, 8.507059e+37 }
 0x9d8   :  { %v722_v20 = vadd.f32 %v1447_v15, %v721_v19 }
 0x9da   :  { %v726_v24 = vsel %vm725_vm3, %v1447_v15, %v722_v20 }
 0x9db   :  { %v731_v28 = vsel %vm728_vm4, %v730_v25, %v726_v24  ;;  %v1451_v32 = vpop.eup %1450 }
 0x9dc   :  { %v661_v39 = vmul.f32 %v1451_v32, %v659_v26  ;;  %vm666_vm6 = vweird.f32 %v1451_v32  ;;  %v734_v55 = vmul.f32 %v731_v28, %v1750_v51  ;;  %v40_v51 = vld [vmem:[%s1938_s0 + $0x28] sm:$0xff] }
 0x9dd   :  { %vm667_vm8 = vmor %vm665_vm7, %vm666_vm6  ;;  %1337 = vmatmul.msk.f32.gmra.mxu0 %vm44_vm0, %v40_v51 }
 0x9de   :  { %v662_v43 = vsub.f32 1.0, %v661_v39 }
 0x9e0   :  { %v663_v44 = vmul.f32 %v1451_v32, %v662_v43 }
 0x9e2   :  { %v664_v47 = vadd.f32 %v1451_v32, %v663_v44 }
 0x9e4   :  { %v668_v50 = vsel %vm667_vm8, %v1451_v32, %v664_v47 }
 0x9e5   :  { %v673_v53 = vsel %vm670_vm9, %v672_v29, %v668_v50 }
 0x9e6   :  { %v676_v58 = vmul.f32 %v673_v53, %v1755_v54 }
 0xa1a   :  { %v737_v27 = vpop.permute.xlu2 %736 }
 0xa1b   :  { %v739_v30 = vmul.f32 %v737_v27, %v731_v28 }
 0xa1d   :  { %741 = vrot.lane.b32.xlu1 %v739_v30, %s1517_s25 }
 0xa3a   :  { %v679_v52 = vpop.permute.xlu1 %678 }
 0xa3b   :  { %v681_v42 = vmul.f32 %v679_v52, %v673_v53 }
 0xa3d   :  { %683 = vrot.lane.b32.xlu0 %v681_v42, %s1517_s25 }
 0xa8f   :  { %v742_v56 = vpop.permute.xlu1 %741 }
 0xa90   :  { %v1787_v49 = vadd.f32 %v742_v56, %v734_v55 }
 0xa92   :  { %1452 = vtanh.f32 %v1787_v49 }
 0xa98   :  { %v1453_v57 = vpop.eup %1452 }
 0xa99   :  { %747 = vrot.lane.b32.xlu0 %v1453_v57, %s1517_s25 }
 0xaaf   :  { %v684_v45 = vpop.permute.xlu0 %683 }
 0xab0   :  { %v1792_v59 = vadd.f32 %v684_v45, %v676_v58 }
 0xab2   :  { %1454 = vtanh.f32 %v1792_v59 }
 0xab8   :  { %v1455_v60 = vpop.eup %1454 }
 0xab9   :  { %689 = vrot.lane.b32.xlu2 %v1455_v60, %s1517_s25 }
 0xb0b   :  { %v748_v61 = vpop.permute.xlu0 %747 }
 0xb0c   :  { %v750_v62 = vmul.f32 %v748_v61, %v731_v28  ;;  %v41_v61 = vld [vmem:[%s1938_s0 + $0x30] sm:$0xff] }
 0xb0d   :  { %1338 = vmatmul.msk.f32.gmra.mxu0 %vm44_vm0, %v41_v61 }
 0xb0e   :  { %777 = vrot.lane.b32.xlu2 %v750_v62, %s1518_s16 }
 0xb13   :  { %v690_v63 = vpop.permute.xlu2 %689 }
 0xb14   :  { %v692_v54 = vmul.f32 %v690_v63, %v673_v53 }
 0xb16   :  { %752 = vrot.lane.b32.xlu1 %v692_v54, %s1518_s16 }
 0xb68   :  { %v778_v1 = vpop.permute.xlu2 %777 }
 0xb69   :  { %1361 = vmatmul.msk.f32.vlgmr.msra.gmra.mxu3 %vm110_vm5, %v778_v1  ;;  %1363 = vmatmul.msk.f32.vlgmr.msrb.gmra.mxu1 %vm110_vm5, %v778_v1  ;;  %v1512_v1 = vld [vmem:[%s1937_s1 + $0x70] sm:$0xff] }
 0xb6a   :  { %1085 = vmatpush.msra.mxu3 %v1597_v34  ;;  %1143 = vmatpush.msrb.mxu1 %v1537_v0  ;;  %v101_v0 = vpop.f32.mrf.mxu0 }
 0xb6c   :  { %1086 = vmatpush.msra.mxu3 %v1609_v36  ;;  %1144 = vmatpush.msrb.mxu1 %v1545_v2  ;;  %v102_v2 = vadd.f32 %v1580_v8, %v101_v0 }
 0xb6e   :  { %1087 = vmatpush.msra.mxu3 %v1619_v38  ;;  %1145 = vmatpush.msrb.mxu1 %v1557_v5 }
 0xb70   :  { %1088 = vmatpush.msra.mxu3 %v1635_v41  ;;  %1146 = vmatpush.msrb.mxu1 %v1564_v6 }
 0xb88   :  { %v753_v3 = vpop.permute.xlu1 %752 }
 0xb89   :  { %1360 = vmatmul.msk.f32.vlgmr.msra.gmra.mxu2 %vm110_vm5, %v753_v3  ;;  %v1513_v3 = vld [vmem:[%s1937_s1 + $0x68] sm:$0xff] }
 0xb8a   :  { %1060 = vmatpush.msra.mxu2 %v1592_v33 }
 0xb8c   :  { %1061 = vmatpush.msra.mxu2 %v1602_v35 }
 0xb8e   :  { %1062 = vmatpush.msra.mxu2 %v1614_v37 }
 0xb90   :  { %1063 = vmatpush.msra.mxu2 %v1630_v40 }
 0xbe6   :  { %v856_v4 = vpop.f32.mrf.mxu1 }
 0xbe7   :  { %v859_v5 = vadd.f32 %v856_v4, %v102_v2 }
 0xbe9   :  { %1456 = vtanh.f32 %v859_v5  ;;  %v1364_v11 = vmul.f32 -1.442695, %v859_v5 }
 0xbec   :  { %v798_v6 = vpop.f32.mrf.mxu3 }
 0xbef   :  { %v1457_v7 = vpop.eup %1456 }
 0xbf0   :  { %882 = vrot.lane.b32.xlu1 %v1457_v7, %s1517_s25 }
 0xc0c   :  { %v773_v9 = vpop.f32.mrf.mxu2 }
 0xc0d   :  { %v799_v10 = vadd.f32 %v798_v6, %v773_v9 }
 0xc0f   :  { %v801_v33 = vadd.f32 %v799_v10, %v1668_v46 }
 0xc11   :  { %1458 = vtanh.f32 %v801_v33  ;;  %v1362_v19 = vmul.f32 -1.442695, %v801_v33 }
 0xc12   :  { %1460 = vpow2.f32 %v1364_v11 }
 0xc17   :  { %v1459_v35 = vpop.eup %1458 }
 0xc18   :  { %824 = vrot.lane.b32.xlu0 %v1459_v35, %s1517_s25  ;;  %v1461_v12 = vpop.eup %1460 }
 0xc19   :  { %v863_v13 = vadd.f32 1.0, %v1461_v12 }
 0xc1b   :  { %1462 = vrcp.f32 %v863_v13  ;;  %v875_v18 = vand.u32 2147483648, %v863_v13  ;;  %vm869_vm11 = vweird.f32 %v863_v13  ;;  %v873_v20 = vand.u32 2147483647, %v863_v13 }
 0xc1c   :  { %1464 = vpow2.f32 %v1362_v19 }
 0xc1d   :  { %v876_v22 = vor.u32 1.1754944e-38, %v875_v18  ;;  %vm874_vm13 = vcmp.eq.f32.partialorder %v873_v20, 8.507059e+37 }
 0xc21   :  { %v1463_v8 = vpop.eup %1462 }
 0xc22   :  { %v865_v14 = vmul.f32 %v1463_v8, %v863_v13  ;;  %vm870_vm10 = vweird.f32 %v1463_v8  ;;  %v1465_v26 = vpop.eup %1464 }
 0xc23   :  { %vm871_vm12 = vmor %vm869_vm11, %vm870_vm10  ;;  %v805_v27 = vadd.f32 1.0, %v1465_v26 }
 0xc24   :  { %v866_v15 = vsub.f32 1.0, %v865_v14 }
 0xc25   :  { %1466 = vrcp.f32 %v805_v27  ;;  %v817_v44 = vand.u32 2147483648, %v805_v27  ;;  %vm811_vm15 = vweird.f32 %v805_v27  ;;  %v815_v47 = vand.u32 2147483647, %v805_v27 }
 0xc26   :  { %v867_v16 = vmul.f32 %v1463_v8, %v866_v15 }
 0xc27   :  { %v818_v31 = vor.u32 1.1754944e-38, %v817_v44  ;;  %vm816_vm2 = vcmp.eq.f32.partialorder %v815_v47, 8.507059e+37 }
 0xc28   :  { %v868_v17 = vadd.f32 %v1463_v8, %v867_v16 }
 0xc2a   :  { %v872_v21 = vsel %vm871_vm12, %v1463_v8, %v868_v17 }
 0xc2b   :  { %v877_v24 = vsel %vm874_vm13, %v876_v22, %v872_v21  ;;  %v1467_v28 = vpop.eup %1466 }
 0xc2c   :  { %v807_v30 = vmul.f32 %v1467_v28, %v805_v27  ;;  %vm812_vm14 = vweird.f32 %v1467_v28  ;;  %v880_v53 = vmul.f32 %v877_v24, %v1787_v49 }
 0xc2d   :  { %vm813_vm1 = vmor %vm811_vm15, %vm812_vm14 }
 0xc2e   :  { %v808_v32 = vsub.f32 1.0, %v807_v30 }
 0xc30   :  { %v809_v39 = vmul.f32 %v1467_v28, %v808_v32 }
 0xc32   :  { %v810_v43 = vadd.f32 %v1467_v28, %v809_v39 }
 0xc34   :  { %v814_v48 = vsel %vm813_vm1, %v1467_v28, %v810_v43 }
 0xc35   :  { %v819_v29 = vsel %vm816_vm2, %v818_v31, %v814_v48 }
 0xc36   :  { %v822_v57 = vmul.f32 %v819_v29, %v1792_v59 }
 0xc62   :  { %v883_v23 = vpop.permute.xlu1 %882 }
 0xc63   :  { %v885_v25 = vmul.f32 %v883_v23, %v877_v24 }
 0xc65   :  { %887 = vrot.lane.b32.xlu0 %v885_v25, %s1517_s25 }
 0xc8a   :  { %v825_v50 = vpop.permute.xlu0 %824 }
 0xc8b   :  { %v827_v52 = vmul.f32 %v825_v50, %v819_v29 }
 0xc8d   :  { %829 = vrot.lane.b32.xlu2 %v827_v52, %s1517_s25 }
 0xcd7   :  { %v888_v42 = vpop.permute.xlu0 %887 }
 0xcd8   :  { %v1824_v55 = vadd.f32 %v888_v42, %v880_v53 }
 0xcda   :  { %1468 = vtanh.f32 %v1824_v55 }
 0xce0   :  { %v1469_v56 = vpop.eup %1468 }
 0xce1   :  { %893 = vrot.lane.b32.xlu2 %v1469_v56, %s1517_s25 }
 0xce7   :  { %v830_v58 = vpop.permute.xlu2 %829 }
 0xce8   :  { %v1829_v45 = vadd.f32 %v830_v58, %v822_v57  ;;  %v42_v57 = vld [vmem:[%s1938_s0 + $0x38] sm:$0xff] }
 0xce9   :  { %1339 = vmatmul.msk.f32.gmra.mxu0 %vm44_vm0, %v42_v57 }
 0xcea   :  { %1470 = vtanh.f32 %v1829_v45 }
 0xcf0   :  { %v1471_v60 = vpop.eup %1470 }
 0xcf1   :  { %835 = vrot.lane.b32.xlu1 %v1471_v60, %s1517_s25 }
 0xd3b   :  { %v894_v51 = vpop.permute.xlu2 %893 }
 0xd3c   :  { %v896_v49 = vmul.f32 %v894_v51, %v877_v24 }
 0xd3e   :  { %923 = vrot.lane.b32.xlu1 %v896_v49, %s1518_s16 }
 0xd63   :  { %v836_v62 = vpop.permute.xlu1 %835 }
 0xd64   :  { %v838_v59 = vmul.f32 %v836_v62, %v819_v29 }
 0xd66   :  { %898 = vrot.lane.b32.xlu0 %v838_v59, %s1518_s16 }
 0xdb0   :  { %v924_v63 = vpop.permute.xlu1 %923 }
 0xdb1   :  { %1366 = vmatmul.msk.f32.vlgmr.msrb.gmra.mxu3 %vm110_vm5, %v924_v63  ;;  %1368 = vmatmul.msk.f32.vlgmr.msra.gmra.mxu1 %vm110_vm5, %v924_v63 }
 0xdb2   :  { %1231 = vmatpush.msrb.mxu3 %v1597_v34  ;;  %v104_v34 = vpop.f32.mrf.mxu0 }
 0xdb4   :  { %1232 = vmatpush.msrb.mxu3 %v1609_v36  ;;  %v1857_v36 = vld [vmem:[%s1937_s1 + $0x30] ss:$0 sm:$0xff] }
 0xdb6   :  { %1233 = vmatpush.msrb.mxu3 %v1619_v38  ;;  %v105_v38 = vadd.f32 %v1857_v36, %v104_v34  ;;  %v1889_v34 = vld [vmem:[%s1937_s1 + $0x78] sm:$0xff] }
 0xdb8   :  { %1234 = vmatpush.msrb.mxu3 %v1635_v41 }
 0xdba   :  { %v107_v49 = vpop.f32.mrf.mxu0 }
 0xdbb   :  { %v108_v61 = vadd.f32 %v1857_v36, %v107_v49 }
 0xdd8   :  { %v899_v54 = vpop.permute.xlu0 %898 }
 0xdd9   :  { %1365 = vmatmul.msk.f32.vlgmr.msrb.gmra.mxu2 %vm110_vm5, %v899_v54 }
 0xdda   :  { %1206 = vmatpush.msrb.mxu2 %v1512_v1 }
 0xddc   :  { %1207 = vmatpush.msrb.mxu2 %v1513_v3 }
 0xdde   :  { %1208 = vmatpush.msrb.mxu2 %v1614_v37 }
 0xde0   :  { %1209 = vmatpush.msrb.mxu2 %v1630_v40 }
 0xe2e   :  { %v1002_v41 = vpop.f32.mrf.mxu1 }
 0xe2f   :  { %v1005_v0 = vadd.f32 %v1002_v41, %v105_v38 }
 0xe31   :  { %1472 = vtanh.f32 %v1005_v0  ;;  %v1369_v6 = vmul.f32 -1.442695, %v1005_v0 }
 0xe34   :  { %v944_v4 = vpop.f32.mrf.mxu3 }
 0xe37   :  { %v1473_v2 = vpop.eup %1472 }
 0xe38   :  { %1028 = vrot.lane.b32.xlu0 %v1473_v2, %s1517_s25 }
 0xe5c   :  { %v919_v5 = vpop.f32.mrf.mxu2 }
 0xe5d   :  { %v945_v7 = vadd.f32 %v944_v4, %v919_v5 }
 0xe5f   :  { %v947_v37 = vadd.f32 %v945_v7, %v1668_v46 }
 0xe61   :  { %1474 = vtanh.f32 %v947_v37  ;;  %v1367_v35 = vmul.f32 -1.442695, %v947_v37 }
 0xe62   :  { %1476 = vpow2.f32 %v1369_v6 }
 0xe67   :  { %v1475_v40 = vpop.eup %1474 }
 0xe68   :  { %970 = vrot.lane.b32.xlu2 %v1475_v40, %s1517_s25  ;;  %v1477_v9 = vpop.eup %1476 }
 0xe69   :  { %v1009_v10 = vadd.f32 1.0, %v1477_v9 }
 0xe6b   :  { %1478 = vrcp.f32 %v1009_v10  ;;  %v1021_v46 = vand.u32 2147483648, %v1009_v10  ;;  %vm1015_vm4 = vweird.f32 %v1009_v10  ;;  %v1019_v16 = vand.u32 2147483647, %v1009_v10 }
 0xe6c   :  { %1480 = vpow2.f32 %v1367_v35 }
 0xe6d   :  { %v1022_v18 = vor.u32 1.1754944e-38, %v1021_v46  ;;  %vm1020_vm7 = vcmp.eq.f32.partialorder %v1019_v16, 8.507059e+37 }
 0xe71   :  { %v1479_v33 = vpop.eup %1478 }
 0xe72   :  { %v1011_v11 = vmul.f32 %v1479_v33, %v1009_v10  ;;  %v1481_v13 = vpop.eup %1480  ;;  %vm1016_vm3 = vweird.f32 %v1479_v33 }
 0xe73   :  { %v951_v14 = vadd.f32 1.0, %v1481_v13  ;;  %vm1017_vm6 = vmor %vm1015_vm4, %vm1016_vm3 }
 0xe74   :  { %v1012_v12 = vsub.f32 1.0, %v1011_v11 }
 0xe75   :  { %1482 = vrcp.f32 %v951_v14  ;;  %v963_v27 = vand.u32 2147483648, %v951_v14  ;;  %vm957_vm9 = vweird.f32 %v951_v14  ;;  %v961_v28 = vand.u32 2147483647, %v951_v14 }
 0xe76   :  { %v1013_v8 = vmul.f32 %v1479_v33, %v1012_v12 }
 0xe77   :  { %v964_v32 = vor.u32 1.1754944e-38, %v963_v27  ;;  %vm962_vm11 = vcmp.eq.f32.partialorder %v961_v28, 8.507059e+37 }
 0xe78   :  { %v1014_v15 = vadd.f32 %v1479_v33, %v1013_v8 }
 0xe7a   :  { %v1018_v17 = vsel %vm1017_vm6, %v1479_v33, %v1014_v15 }
 0xe7b   :  { %v1023_v20 = vsel %vm1020_vm7, %v1022_v18, %v1018_v17  ;;  %v1483_v22 = vpop.eup %1482 }
 0xe7c   :  { %v953_v23 = vmul.f32 %v1483_v22, %v951_v14  ;;  %vm958_vm8 = vweird.f32 %v1483_v22  ;;  %v1026_v47 = vmul.f32 %v1023_v20, %v1824_v55 }
 0xe7d   :  { %vm959_vm10 = vmor %vm957_vm9, %vm958_vm8 }
 0xe7e   :  { %v954_v24 = vsub.f32 1.0, %v953_v23 }
 0xe80   :  { %v955_v25 = vmul.f32 %v1483_v22, %v954_v24 }
 0xe82   :  { %v956_v26 = vadd.f32 %v1483_v22, %v955_v25 }
 0xe84   :  { %v960_v30 = vsel %vm959_vm10, %v1483_v22, %v956_v26 }
 0xe85   :  { %v965_v43 = vsel %vm962_vm11, %v964_v32, %v960_v30 }
 0xe86   :  { %v968_v29 = vmul.f32 %v965_v43, %v1829_v45 }
 0xeaa   :  { %v1029_v19 = vpop.permute.xlu0 %1028 }
 0xeab   :  { %v1031_v21 = vmul.f32 %v1029_v19, %v1023_v20 }
 0xead   :  { %1033 = vrot.lane.b32.xlu2 %v1031_v21, %s1517_s25 }
 0xec2   :  { %v971_v39 = vpop.permute.xlu2 %970 }
 0xec3   :  { %v973_v44 = vmul.f32 %v971_v39, %v965_v43 }
 0xec5   :  { %975 = vrot.lane.b32.xlu1 %v973_v44, %s1517_s25 }
 0xf07   :  { %v1034_v48 = vpop.permute.xlu2 %1033 }
 0xf08   :  { %v1866_v31 = vadd.f32 %v1034_v48, %v1026_v47 }
 0xf0a   :  { %1484 = vtanh.f32 %v1866_v31 }
 0xf10   :  { %v1485_v50 = vpop.eup %1484 }
 0xf11   :  { %1039 = vrot.lane.b32.xlu1 %v1485_v50, %s1517_s25 }
 0xf37   :  { %v976_v52 = vpop.permute.xlu1 %975 }
 0xf38   :  { %v1871_v53 = vadd.f32 %v976_v52, %v968_v29 }
 0xf3a   :  { %1486 = vtanh.f32 %v1871_v53 }
 0xf40   :  { %v1487_v42 = vpop.eup %1486 }
 0xf41   :  { %981 = vrot.lane.b32.xlu0 %v1487_v42, %s1517_s25 }
 0xf83   :  { %v1040_v56 = vpop.permute.xlu1 %1039 }
 0xf84   :  { %v1042_v55 = vmul.f32 %v1040_v56, %v1023_v20 }
 0xf86   :  { %1069 = vrot.lane.b32.xlu0 %v1042_v55, %s1518_s16 }
 0xfb3   :  { %v982_v58 = vpop.permute.xlu0 %981 }
 0xfb4   :  { %v984_v45 = vmul.f32 %v982_v58, %v965_v43 }
 0xfb6   :  { %1044 = vrot.lane.b32.xlu2 %v984_v45, %s1518_s16 }
 0xff8   :  { %v1070_v60 = vpop.permute.xlu0 %1069 }
 0xff9   :  { %1371 = vmatmul.msk.f32.vlgmr.msra.gmra.mxu3 %vm110_vm5, %v1070_v60  ;;  %1373 = vmatmul.msk.f32.vlgmr.msrb.gmra.mxu1 %vm110_vm5, %v1070_v60 }
0x1010   :  { %v1045_v51 = vpop.permute.xlu2 %1044 }
0x1011   :  { %1370 = vmatmul.msk.f32.vlgmr.msra.gmra.mxu2 %vm110_vm5, %v1045_v51 }
0x1076   :  { %v1148_v62 = vpop.f32.mrf.mxu1 }
0x1077   :  { %v1151_v59 = vadd.f32 %v1148_v62, %v108_v61 }
0x1079   :  { %1488 = vtanh.f32 %v1151_v59  ;;  %v1374_v36 = vmul.f32 -1.442695, %v1151_v59 }
0x107c   :  { %v1090_v54 = vpop.f32.mrf.mxu3 }
0x107f   :  { %v1489_v63 = vpop.eup %1488 }
0x1080   :  { %1174 = vrot.lane.b32.xlu2 %v1489_v63, %s1517_s25 }
0x1094   :  { %v1065_v1 = vpop.f32.mrf.mxu2 }
0x1095   :  { %v1091_v3 = vadd.f32 %v1090_v54, %v1065_v1 }
0x1097   :  { %v1093_v38 = vadd.f32 %v1889_v34, %v1091_v3 }
0x1099   :  { %1490 = vtanh.f32 %v1093_v38  ;;  %v1372_v13 = vmul.f32 -1.442695, %v1093_v38 }
0x109a   :  { %1492 = vpow2.f32 %v1374_v36 }
0x109f   :  { %v1491_v41 = vpop.eup %1490 }
0x10a0   :  { %1116 = vrot.lane.b32.xlu1 %v1491_v41, %s1517_s25  ;;  %v1493_v0 = vpop.eup %1492 }
0x10a1   :  { %v1155_v2 = vadd.f32 1.0, %v1493_v0 }
0x10a3   :  { %1494 = vrcp.f32 %v1155_v2  ;;  %v1167_v6 = vand.u32 2147483648, %v1155_v2  ;;  %vm1161_vm13 = vweird.f32 %v1155_v2  ;;  %v1165_v9 = vand.u32 2147483647, %v1155_v2 }
0x10a4   :  { %1496 = vpow2.f32 %v1372_v13 }
0x10a5   :  { %v1168_v33 = vor.u32 1.1754944e-38, %v1167_v6  ;;  %vm1166_vm15 = vcmp.eq.f32.partialorder %v1165_v9, 8.507059e+37 }
0x10a9   :  { %v1495_v4 = vpop.eup %1494 }
0x10aa   :  { %v1157_v5 = vmul.f32 %v1495_v4, %v1155_v2  ;;  %vm1162_vm12 = vweird.f32 %v1495_v4  ;;  %v1497_v8 = vpop.eup %1496 }
0x10ab   :  { %vm1163_vm14 = vmor %vm1161_vm13, %vm1162_vm12  ;;  %v1097_v14 = vadd.f32 1.0, %v1497_v8 }
0x10ac   :  { %v1158_v7 = vsub.f32 1.0, %v1157_v5  ;;  %v30_v5 = vld [vmem:[%s1937_s1 + $0x98] sm:$0xff] }
0x10ad   :  { %1498 = vrcp.f32 %v1097_v14  ;;  %v1109_v19 = vand.u32 2147483648, %v1097_v14  ;;  %vm1103_vm2 = vweird.f32 %v1097_v14  ;;  %v1107_v20 = vand.u32 2147483647, %v1097_v14  ;;  %1294 = vmatpush.msrb.mxu0 %v30_v5 }
0x10ae   :  { %v1159_v37 = vmul.f32 %v1495_v4, %v1158_v7  ;;  %v29_v7 = vld [vmem:[%s1937_s1 + $0x90] sm:$0xff] }
0x10af   :  { %v1110_v22 = vor.u32 1.1754944e-38, %v1109_v19  ;;  %vm1108_vm4 = vcmp.eq.f32.partialorder %v1107_v20, 8.507059e+37  ;;  %1295 = vmatpush.msrb.mxu0 %v29_v7 }
0x10b0   :  { %v1160_v40 = vadd.f32 %v1495_v4, %v1159_v37  ;;  %v28_v37 = vld [vmem:[%s1937_s1 + $0x88] sm:$0xff] }
0x10b1   :  { %1296 = vmatpush.msrb.mxu0 %v28_v37 }
0x10b2   :  { %v1164_v10 = vsel %vm1163_vm14, %v1495_v4, %v1160_v40  ;;  %v27_v40 = vld [vmem:[%s1937_s1 + $0x80] sm:$0xff] }
0x10b3   :  { %v1169_v11 = vsel %vm1166_vm15, %v1168_v33, %v1164_v10  ;;  %v1499_v15 = vpop.eup %1498  ;;  %1297 = vmatpush.msrb.mxu0 %v27_v40  ;;  %v33_v10 = vld [vmem:[%s1937_s1 + $0xb0] sm:$0xff] }
0x10b4   :  { %v1099_v46 = vmul.f32 %v1499_v15, %v1097_v14  ;;  %vm1104_vm1 = vweird.f32 %v1499_v15  ;;  %v1172_v26 = vmul.f32 %v1169_v11, %v1866_v31  ;;  %1320 = vmatpush.msra.mxu1 %v33_v10  ;;  %v34_v14 = vld [vmem:[%s1937_s1 + $0xb8] sm:$0xff] }
0x10b5   :  { %vm1105_vm3 = vmor %vm1103_vm2, %vm1104_vm1 }
0x10b6   :  { %v1100_v16 = vsub.f32 1.0, %v1099_v46 }
0x10b8   :  { %v1101_v17 = vmul.f32 %v1499_v15, %v1100_v16 }
0x10ba   :  { %v1102_v18 = vadd.f32 %v1499_v15, %v1101_v17 }
0x10bc   :  { %v1106_v21 = vsel %vm1105_vm3, %v1499_v15, %v1102_v18 }
0x10bd   :  { %v1111_v24 = vsel %vm1108_vm4, %v1110_v22, %v1106_v21 }
0x10be   :  { %v1114_v32 = vmul.f32 %v1111_v24, %v1871_v53 }
0x10da   :  { %v1175_v35 = vpop.permute.xlu2 %1174 }
0x10db   :  { %v1177_v12 = vmul.f32 %v1175_v35, %v1169_v11  ;;  %v32_v35 = vld [vmem:[%s1937_s1 + $0xa8] sm:$0xff] }
0x10dc   :  { %1321 = vmatpush.msra.mxu1 %v32_v35 }
0x10dd   :  { %1179 = vrot.lane.b32.xlu1 %v1177_v12, %s1517_s25 }
0x1112   :  { %v1117_v23 = vpop.permute.xlu1 %1116 }
0x1113   :  { %v1119_v25 = vmul.f32 %v1117_v23, %v1111_v24 }
0x1115   :  { %1121 = vrot.lane.b32.xlu0 %v1119_v25, %s1517_s25 }
0x114f   :  { %v1180_v27 = vpop.permute.xlu1 %1179 }
0x1150   :  { %v1182_v28 = vadd.f32 %v1180_v27, %v1172_v26 }
0x1152   :  { %1500 = vtanh.f32 %v1182_v28 }
0x1158   :  { %v1501_v30 = vpop.eup %1500 }
0x1159   :  { %1185 = vrot.lane.b32.xlu0 %v1501_v30, %s1517_s25 }
0x1187   :  { %v1122_v39 = vpop.permute.xlu0 %1121 }
0x1188   :  { %v1124_v43 = vadd.f32 %v1122_v39, %v1114_v32 }
0x118a   :  { %1502 = vtanh.f32 %v1124_v43 }
0x1190   :  { %v1503_v44 = vpop.eup %1502 }
0x1191   :  { %1127 = vrot.lane.b32.xlu2 %v1503_v44, %s1517_s25 }
0x11cb   :  { %v1186_v47 = vpop.permute.xlu0 %1185 }
0x11cc   :  { %v1188_v48 = vmul.f32 %v1186_v47, %v1169_v11  ;;  %v31_v11 = vld [vmem:[%s1937_s1 + $0xa0] sm:$0xff] }
0x11ce   :  { %1215 = vrot.lane.b32.xlu2 %v1188_v48, %s1518_s16 }
0x11eb   :  { %v1128_v50 = vpop.permute.xlu2 %1127 }
0x11ec   :  { %v1130_v31 = vmul.f32 %v1128_v50, %v1111_v24 }
0x11ee   :  { %1190 = vrot.lane.b32.xlu1 %v1130_v31, %s1518_s16 }
0x1228   :  { %v1216_v29 = vpop.permute.xlu2 %1215 }
0x1229   :  { %1376 = vmatmul.msk.f32.vlgmr.msrb.gmra.mxu3 %vm110_vm5, %v1216_v29 }
0x1260   :  { %v1191_v52 = vpop.permute.xlu1 %1190 }
0x1261   :  { %1375 = vmatmul.msk.f32.vlgmr.msrb.gmra.mxu2 %vm110_vm5, %v1191_v52 }
0x12ac   :  { %v1236_v53 = vpop.f32.mrf.mxu3 }
0x12e4   :  { %v1211_v42 = vpop.f32.mrf.mxu2 }
0x12e5   :  { %v1237_v56 = vadd.f32 %v1236_v53, %v1211_v42 }
0x12e7   :  { %v1239_v55 = vadd.f32 %v1889_v34, %v1237_v56 }
0x12e9   :  { %1504 = vtanh.f32 %v1239_v55  ;;  %v1377_v58 = vmul.f32 -1.442695, %v1239_v55 }
0x12eb   :  { %1506 = vpow2.f32 %v1377_v58 }
0x12ef   :  { %v1505_v57 = vpop.eup %1504 }
0x12f0   :  { %1262 = vrot.lane.b32.xlu0 %v1505_v57, %s1517_s25 }
0x12f1   :  { %v1507_v45 = vpop.eup %1506 }
0x12f2   :  { %v1243_v60 = vadd.f32 1.0, %v1507_v45 }
0x12f4   :  { %1508 = vrcp.f32 %v1243_v60  ;;  %v1255_v63 = vand.u32 2147483648, %v1243_v60  ;;  %vm1249_vm7 = vweird.f32 %v1243_v60  ;;  %v1253_v54 = vand.u32 2147483647, %v1243_v60 }
0x12f6   :  { %v1256_v3 = vor.u32 1.1754944e-38, %v1255_v63  ;;  %vm1254_vm9 = vcmp.eq.f32.partialorder %v1253_v54, 8.507059e+37 }
0x12fa   :  { %v1509_v51 = vpop.eup %1508 }
0x12fb   :  { %v1245_v49 = vmul.f32 %v1509_v51, %v1243_v60  ;;  %vm1250_vm6 = vweird.f32 %v1509_v51 }
0x12fc   :  { %vm1251_vm8 = vmor %vm1249_vm7, %vm1250_vm6 }
0x12fd   :  { %v1246_v61 = vsub.f32 1.0, %v1245_v49 }
0x12ff   :  { %v1247_v62 = vmul.f32 %v1509_v51, %v1246_v61 }
0x1301   :  { %v1248_v59 = vadd.f32 %v1509_v51, %v1247_v62 }
0x1303   :  { %v1252_v1 = vsel %vm1251_vm8, %v1509_v51, %v1248_v59 }
0x1304   :  { %v1257_v38 = vsel %vm1254_vm9, %v1256_v3, %v1252_v1 }
0x1305   :  { %v1260_v36 = vmul.f32 %v1257_v38, %v1124_v43 }
0x1362   :  { %v1263_v34 = vpop.permute.xlu0 %1262 }
0x1363   :  { %v1265_v41 = vmul.f32 %v1263_v34, %v1257_v38 }
0x1365   :  { %1267 = vrot.lane.b32.xlu1 %v1265_v41, %s1517_s25 }
0x13d7   :  { %v1268_v0 = vpop.permute.xlu1 %1267 }
0x13d8   :  { %v1270_v2 = vadd.f32 %v1268_v0, %v1260_v36 }
0x13da   :  { %1510 = vtanh.f32 %v1270_v2 }
0x13e0   :  { %v1511_v4 = vpop.eup %1510 }
0x13e1   :  { %1273 = vrot.lane.b32.xlu2 %v1511_v4, %s1517_s25 }
0x143b   :  { %v1274_v6 = vpop.permute.xlu2 %1273 }
0x143c   :  { %v1276_v9 = vmul.f32 %v1274_v6, %v1257_v38 }
0x143e   :  { %1278 = vrot.lane.b32.xlu0 %v1276_v9, %s1518_s16 }
0x14b0   :  { %v1279_v33 = vpop.permute.xlu0 %1278 }
0x14b1   :  { %1378 = vmatmul.msk.f32.vlgmr.msrb.gmra.mxu0 %vm110_vm5, %v1279_v33  ;;  %vm1326_vm5 = vcmask 15360  }
0x152e   :  { %v1299_v12 = vpop.f32.mrf.mxu0 }
0x152f   :  { %v1300_v13 = vadd.f32 %v1299_v12, %v31_v11 }
0x1531   :  { %v1302_v8 = vmax.f32 %v1300_v13, 0.0 }
0x1533   :  { %1379 = vmatmul.msk.f32.vlgmr.msra.gmra.mxu1 %vm44_vm0, %v1302_v8 }
0x15b0   :  { %v1323_v15 = vpop.f32.mrf.mxu1 }
0x15b1   :  { %v1324_v46 = vadd.f32 %v1323_v15, %v34_v14 }
0x15b3   :  { %1327 = vst.msk [vmem:[%s1939_s2] sm:$0xff] %vm1326_vm5, %v1324_v46 }

</bundles_post_ra>
